<compile_context>
chip_gen: v6e
topology: v6e:2x2x1
jax: 0.10.0
libtpu: 0.0.40
codegen_flags: <defaults>
</compile_context>

<pallas_src>
import math
import functools

import jax
import jax.numpy as jnp
from jax.experimental import pallas as pl
from jax.experimental.pallas import tpu as pltpu


def _round_up(x, m):
    return ((x + m - 1) // m) * m


def _cdiv(a, b):
    return -(-a // b)


def convlstm_cell_kernel(xh_ref, w_ref, b_ref, c0_ref, hc_ref, *,
                         th, w_img, pad, k, cout, n_pad):
    """One (batch, row-tile) step of the fused ConvLSTM cell.

    xh_ref : (1, Ht+2p, W+2p, Cxh)  bf16  spatially padded [x | h0] (NHWC), one image
    w_ref  : (k*k, Cxh, Np)         bf16  fused conv weights, gate order [i|f|o|g]
    b_ref  : (1, Np)                f32   fused bias (b_ih + b_hh), same order
    c0_ref : (TH*W, Cout)           f32
    hc_ref : (TH*W, Wout)           f32   packed output [h1 | c1 | pad]
    """
    rt = pl.program_id(1)
    mt = th * w_img
    row0 = rt * th

    # Haloed row window for this tile.  The whole padded image block is resident
    # in VMEM (its block index only changes with the batch grid axis), so this is
    # a VMEM-local dynamic slice, not an HBM access.
    win = xh_ref[0, pl.ds(row0, th + 2 * pad), :, :]          # (TH+2p, W+2p, Cxh) bf16

    # In-VMEM "im2col": k*k statically shifted views, each contracted on the MXU
    # with its (Cxh, Np) weight slice.  f32 accumulation, initialized with bias.
    acc = jnp.broadcast_to(b_ref[...], (mt, n_pad))           # f32
    for dy in range(k):
        for dx in range(k):
            lhs = win[dy:dy + th, dx:dx + w_img, :].reshape(mt, -1)
            acc = acc + jnp.dot(lhs, w_ref[dy * k + dx],
                                preferred_element_type=jnp.float32)

    # Gate order [i | f | o | g]: one hard_sigmoid pass over 3*Cout lanes (pure
    # VPU mul+clip), one tanh (EUP) for g, one more tanh for the cell output.
    sig = jnp.clip(acc[:, :3 * cout] * (1.0 / 5.0) + 0.5, 0.0, 1.0)
    i_g = sig[:, :cout]
    f_g = sig[:, cout:2 * cout]
    o_g = sig[:, 2 * cout:3 * cout]
    g_g = jnp.tanh(acc[:, 3 * cout:4 * cout])

    c1 = f_g * c0_ref[...] + i_g * g_g
    h1 = o_g * jnp.tanh(c1)

    # Direct slice stores (no concatenate temp); lane-padding columns of the
    # 128-multiple-wide output block are left untouched (wrapper slices them off).
    hc_ref[:, :cout] = h1
    hc_ref[:, cout:2 * cout] = c1


def _pinned_spec(shape, index_map):
    """BlockSpec pinned to a single VMEM buffer (constant block), if supported."""
    buffered = getattr(pl, "Buffered", None)
    if buffered is not None:
        try:
            return pl.BlockSpec(shape, index_map, pipeline_mode=buffered(1))
        except (TypeError, ValueError):
            pass
    return pl.BlockSpec(shape, index_map)


def _vmem_limit_bytes():
    """Per-generation VMEM limit: headroom below physical (52 MiB on v7x, 96 on v5e/v6e)."""
    cap = None
    try:
        cap = getattr(pltpu.get_tpu_info(), "vmem_capacity_bytes", None)
    except Exception:
        cap = None
    if cap is None:
        cap = 64 * 1024 * 1024                       # assume the smallest (v7x per-TC)
    if cap >= 96 * 1024 * 1024:                      # v5e / v6e: 128 MiB physical
        return 96 * 1024 * 1024
    return 52 * 1024 * 1024                          # v7x: 64 MiB physical


@functools.partial(jax.jit, static_argnames=("kernel_size", "padding"))
def convlstm_cell_forward(x, h0, c0, w_ih, w_hh, b_ih, b_hh,
                          kernel_size=3, padding=1):
    """Matches ConvLSTMCell_C.forward for stride=1, dilation=1, groups=1."""
    B, Cin, H, W = x.shape
    Cout = h0.shape[1]
    k = kernel_size
    p = padding
    # The PyTorch module only shape-checks (wx + wh) when both convs preserve
    # H x W, i.e. padding == k // 2 with an odd kernel.
    assert k % 2 == 1 and p == k // 2, \
        "ConvLSTMCell_C requires an odd kernel with padding == kernel_size // 2"
    # TODO(synk): stride != 1, dilation != 1 and groups != 1 are not implemented.

    Cxh = Cin + Cout
    Np = _round_up(4 * Cout, 128)      # total gate width padded once (no per-gate pad)
    Wout = _round_up(2 * Cout, 128)    # lane-dense packed [h1 | c1] output width

    # ---- row tiling: TH rows/tile with halo p, >= 4 grid steps, VMEM budget ----
    vmem_limit = _vmem_limit_bytes()
    vmem_budget = int(vmem_limit * 0.75)
    sub = 8 // math.gcd(W, 8)          # TH multiple so (TH * W) % 8 == 0

    def vmem_bytes(th):
        nt = _cdiv(H, th)
        mt = th * W
        ht = nt * th
        img = (ht + 2 * p) * (W + 2 * p) * Cxh * 2          # bf16 resident image block
        win = (th + 2 * p) * (W + 2 * p) * Cxh * 2          # in-kernel window load
        wts = k * k * Cxh * Np * 2
        bias = Np * 4
        c0b = mt * Cout * 4
        outb = mt * Wout * 4
        inter = mt * (Np * 4 + 8 * Cout * 4 + 2 * Cxh * 2)  # acc + gate/c1/h1 + lhs temps
        # streamed blocks double-buffered; weights counted x2 (Buffered(1) fallback)
        return 2 * (img + c0b + outb + wts + bias) + win + inter

    nt_target = min(max(1, _cdiv(4, B)), _cdiv(H, sub))     # >= 4 total grid steps
    th = _round_up(_cdiv(H, nt_target), sub)
    while th > sub and vmem_bytes(th) > vmem_budget:
        th -= sub
    TH = th
    NT = _cdiv(H, TH)
    MT = TH * W
    Ht = NT * TH
    # TODO(synk): very large images would also need W / channel blocking of the
    # resident image block (halo DMA from pl.ANY); not needed at these shapes.

    # ---- wrapper glue (plain JAX): NHWC, spatial padding, fused weights ----
    # TODO(synk): keep (x, h, c) NHWC across recurrent timesteps so these
    # NCHW<->NHWC transposes disappear from the recurrent loop.
    xh = jnp.concatenate([x, h0], axis=1)                    # (B, Cxh, H, W)
    xh = xh.transpose(0, 2, 3, 1).astype(jnp.bfloat16)       # (B, H, W, Cxh)
    xh = jnp.pad(xh, ((0, 0), (p, (Ht - H) + p), (p, p), (0, 0)))

    c0_nhwc = c0.transpose(0, 2, 3, 1).astype(jnp.float32)   # (B, H, W, Cout)
    c0_nhwc = jnp.pad(c0_nhwc, ((0, 0), (0, Ht - H), (0, 0), (0, 0)))
    c0_flat = c0_nhwc.reshape(B * Ht * W, Cout)

    # Fused weights: [W_ih | W_hh] on the input-channel axis, gates reordered to
    # [i | f | o | g], gate axis zero-padded to Np, laid out (k*k, Cxh, Np).
    perm = jnp.concatenate([jnp.arange(0, Cout), jnp.arange(Cout, 2 * Cout),
                            jnp.arange(3 * Cout, 4 * Cout),
                            jnp.arange(2 * Cout, 3 * Cout)])
    w_cat = jnp.concatenate([w_ih, w_hh], axis=1)[perm]      # (4*Cout, Cxh, k, k)
    w_cat = jnp.pad(w_cat, ((0, Np - 4 * Cout), (0, 0), (0, 0), (0, 0)))
    w_fused = w_cat.transpose(2, 3, 1, 0).reshape(k * k, Cxh, Np).astype(jnp.bfloat16)

    bias = (b_ih + b_hh)[perm].astype(jnp.float32)
    bias = jnp.pad(bias, (0, Np - 4 * Cout)).reshape(1, Np)

    kernel = functools.partial(convlstm_cell_kernel, th=TH, w_img=W, pad=p, k=k,
                               cout=Cout, n_pad=Np)

    hc = pl.pallas_call(
        kernel,
        out_shape=jax.ShapeDtypeStruct((B * Ht * W, Wout), jnp.float32),
        grid_spec=pltpu.PrefetchScalarGridSpec(
            num_scalar_prefetch=0,
            grid=(B, NT),
            in_specs=[
                # whole padded image per batch; resident across the NT row tiles
                pl.BlockSpec((1, Ht + 2 * p, W + 2 * p, Cxh),
                             lambda b, rt: (b, 0, 0, 0)),
                _pinned_spec((k * k, Cxh, Np), lambda b, rt: (0, 0, 0)),
                _pinned_spec((1, Np), lambda b, rt: (0, 0)),
                pl.BlockSpec((MT, Cout), lambda b, rt: (b * NT + rt, 0)),
            ],
            out_specs=pl.BlockSpec((MT, Wout), lambda b, rt: (b * NT + rt, 0)),
        ),
        compiler_params=pltpu.CompilerParams(
            dimension_semantics=("parallel", "parallel"),
            vmem_limit_bytes=vmem_limit),
    )(xh, w_fused, bias, c0_flat)

    hc = hc.reshape(B, Ht, W, Wout)[:, :H]
    h1 = hc[..., :Cout].transpose(0, 3, 1, 2)
    c1 = hc[..., Cout:2 * Cout].transpose(0, 3, 1, 2)
    return h1, (h1, c1)


# ---------------- pure-JAX f32 reference (correctness check) ----------------
def _reference(x, h0, c0, w_ih, w_hh, b_ih, b_hh, k=3):
    pad = k // 2
    dn = jax.lax.conv_dimension_numbers(x.shape, w_ih.shape, ("NCHW", "OIHW", "NCHW"))
    wx = jax.lax.conv_general_dilated(x, w_ih, (1, 1), [(pad, pad), (pad, pad)],
                                      dimension_numbers=dn) + b_ih[None, :, None, None]
    dn2 = jax.lax.conv_dimension_numbers(h0.shape, w_hh.shape, ("NCHW", "OIHW", "NCHW"))
    wh = jax.lax.conv_general_dilated(h0, w_hh, (1, 1), [(pad, pad), (pad, pad)],
                                      dimension_numbers=dn2) + b_hh[None, :, None, None]
    wxhc = wx + wh
    Cout = h0.shape[1]
    hs = lambda v: jnp.clip((v + 2.5) / 5.0, 0.0, 1.0)
    i = hs(wxhc[:, :Cout]); f = hs(wxhc[:, Cout:2 * Cout])
    g = jnp.tanh(wxhc[:, 2 * Cout:3 * Cout]); o = hs(wxhc[:, 3 * Cout:])
    c1 = f * c0 + i * g
    h1 = o * jnp.tanh(c1)
    return h1, c1


if __name__ == "__main__":
    B, Cin, Cout, H, W, K = 2, 4, 32, 16, 16, 3

    key = jax.random.PRNGKey(0)
    ks = jax.random.split(key, 7)

    # reset_parameters(): stdv = 1 / sqrt(4 * in_channels * kh * kw)
    stdv = 1.0 / math.sqrt(4 * Cin * K * K)
    uni = lambda k_, shape: jax.random.uniform(k_, shape, jnp.float32, -stdv, stdv)

    w_ih = uni(ks[0], (4 * Cout, Cin, K, K))
    w_hh = uni(ks[1], (4 * Cout, Cout, K, K))
    b_ih = uni(ks[2], (4 * Cout,))
    b_hh = uni(ks[3], (4 * Cout,))

    x = jax.random.normal(ks[4], (B, Cin, H, W), jnp.float32)
    h0 = jax.random.normal(ks[5], (B, Cout, H, W), jnp.float32)
    c0 = jax.random.normal(ks[6], (B, Cout, H, W), jnp.float32)

    h1, (h1b, c1) = convlstm_cell_forward(x, h0, c0, w_ih, w_hh, b_ih, b_hh,
                                          kernel_size=K, padding=K // 2)
    jax.block_until_ready((h1, c1))

    h1_ref, c1_ref = _reference(x, h0, c0, w_ih, w_hh, b_ih, b_hh, k=K)
    # bf16 matmul operands (f32 accumulation) -> loosened tolerance vs f32 ref.
    assert jnp.allclose(h1, h1_ref, atol=2e-2, rtol=2e-2), "h1 mismatch"
    assert jnp.allclose(c1, c1_ref, atol=2e-2, rtol=2e-2), "c1 mismatch"

    print("KERNEL_OK")
</pallas_src>

<mosaic_0001>
module attributes {stable_mosaic.version = 11 : i64} {
  func.func @convlstm_cell_kernel(%arg0: i32, %arg1: i32, %arg2: memref<1x18x18x36xbf16, #tpu.memory_space<vmem>>, %arg3: memref<9x36x128xbf16, #tpu.memory_space<vmem>>, %arg4: memref<1x128xf32, #tpu.memory_space<vmem>>, %arg5: memref<128x32xf32, #tpu.memory_space<vmem>>, %arg6: memref<128x128xf32, #tpu.memory_space<vmem>>) attributes {dimension_semantics = [#tpu.dimension_semantics<parallel>, #tpu.dimension_semantics<parallel>], iteration_bounds = array<i64: 2, 2>, scalar_prefetch = 0 : i64, scratch_operands = 0 : i64, tpu.core_type = #tpu.core_type<tc>, window_params = [{transform_indices = @transform_0, window_bounds = array<i64: 1, 18, 18, 36>}, {pipeline_mode = #tpu.pipeline_mode<synchronous>, transform_indices = @transform_1, window_bounds = array<i64: 9, 36, 128>}, {pipeline_mode = #tpu.pipeline_mode<synchronous>, transform_indices = @transform_2, window_bounds = array<i64: 1, 128>}, {transform_indices = @transform_3, window_bounds = array<i64: 128, 32>}, {transform_indices = @transform_4, window_bounds = array<i64: 128, 128>}]} {
    %c8_i32 = arith.constant 8 : i32
    %0 = arith.muli %arg1, %c8_i32 : i32
    %c0 = arith.constant 0 : index
    %1 = arith.index_cast %0 : i32 to index
    %c0_0 = arith.constant 0 : index
    %c0_1 = arith.constant 0 : index
    %2 = vector.load %arg2[%c0, %1, %c0_0, %c0_1] : memref<1x18x18x36xbf16, #tpu.memory_space<vmem>>, vector<1x10x18x36xbf16>
    %3 = vector.shape_cast %2 : vector<1x10x18x36xbf16> to vector<10x18x36xbf16>
    %c0_2 = arith.constant 0 : index
    %c0_3 = arith.constant 0 : index
    %4 = vector.load %arg4[%c0_2, %c0_3] : memref<1x128xf32, #tpu.memory_space<vmem>>, vector<1x128xf32>
    %5 = vector.shape_cast %4 : vector<1x128xf32> to vector<1x128xf32>
    %6 = vector.broadcast %5 : vector<1x128xf32> to vector<128x128xf32>
    %7 = vector.extract_strided_slice %3 {offsets = [0, 0, 0], sizes = [8, 16, 36], strides = [1, 1, 1]} : vector<10x18x36xbf16> to vector<8x16x36xbf16>
    %8 = vector.shape_cast %7 : vector<8x16x36xbf16> to vector<128x36xbf16>
    %c0_4 = arith.constant 0 : index
    %c0_5 = arith.constant 0 : index
    %c0_6 = arith.constant 0 : index
    %9 = vector.load %arg3[%c0_4, %c0_5, %c0_6] : memref<9x36x128xbf16, #tpu.memory_space<vmem>>, vector<1x36x128xbf16>
    %10 = vector.shape_cast %9 : vector<1x36x128xbf16> to vector<36x128xbf16>
    %cst = arith.constant dense<0.000000e+00> : vector<128x128xf32>
    %11 = tpu.matmul %8, %10, %cst {dimension_numbers = #tpu.dot_dimension_numbers<[1], [0], [0], [1], [0, 0, 1, 1], [], []>} : vector<128x36xbf16>, vector<36x128xbf16>, vector<128x128xf32> -> vector<128x128xf32>
    %12 = arith.addf %6, %11 : vector<128x128xf32>
    %13 = vector.extract_strided_slice %3 {offsets = [0, 1, 0], sizes = [8, 16, 36], strides = [1, 1, 1]} : vector<10x18x36xbf16> to vector<8x16x36xbf16>
    %14 = vector.shape_cast %13 : vector<8x16x36xbf16> to vector<128x36xbf16>
    %c1 = arith.constant 1 : index
    %c0_7 = arith.constant 0 : index
    %c0_8 = arith.constant 0 : index
    %15 = vector.load %arg3[%c1, %c0_7, %c0_8] : memref<9x36x128xbf16, #tpu.memory_space<vmem>>, vector<1x36x128xbf16>
    %16 = vector.shape_cast %15 : vector<1x36x128xbf16> to vector<36x128xbf16>
    %cst_9 = arith.constant dense<0.000000e+00> : vector<128x128xf32>
    %17 = tpu.matmul %14, %16, %cst_9 {dimension_numbers = #tpu.dot_dimension_numbers<[1], [0], [0], [1], [0, 0, 1, 1], [], []>} : vector<128x36xbf16>, vector<36x128xbf16>, vector<128x128xf32> -> vector<128x128xf32>
    %18 = arith.addf %12, %17 : vector<128x128xf32>
    %19 = vector.extract_strided_slice %3 {offsets = [0, 2, 0], sizes = [8, 16, 36], strides = [1, 1, 1]} : vector<10x18x36xbf16> to vector<8x16x36xbf16>
    %20 = vector.shape_cast %19 : vector<8x16x36xbf16> to vector<128x36xbf16>
    %c2 = arith.constant 2 : index
    %c0_10 = arith.constant 0 : index
    %c0_11 = arith.constant 0 : index
    %21 = vector.load %arg3[%c2, %c0_10, %c0_11] : memref<9x36x128xbf16, #tpu.memory_space<vmem>>, vector<1x36x128xbf16>
    %22 = vector.shape_cast %21 : vector<1x36x128xbf16> to vector<36x128xbf16>
    %cst_12 = arith.constant dense<0.000000e+00> : vector<128x128xf32>
    %23 = tpu.matmul %20, %22, %cst_12 {dimension_numbers = #tpu.dot_dimension_numbers<[1], [0], [0], [1], [0, 0, 1, 1], [], []>} : vector<128x36xbf16>, vector<36x128xbf16>, vector<128x128xf32> -> vector<128x128xf32>
    %24 = arith.addf %18, %23 : vector<128x128xf32>
    %25 = vector.extract_strided_slice %3 {offsets = [1, 0, 0], sizes = [8, 16, 36], strides = [1, 1, 1]} : vector<10x18x36xbf16> to vector<8x16x36xbf16>
    %26 = vector.shape_cast %25 : vector<8x16x36xbf16> to vector<128x36xbf16>
    %c3 = arith.constant 3 : index
    %c0_13 = arith.constant 0 : index
    %c0_14 = arith.constant 0 : index
    %27 = vector.load %arg3[%c3, %c0_13, %c0_14] : memref<9x36x128xbf16, #tpu.memory_space<vmem>>, vector<1x36x128xbf16>
    %28 = vector.shape_cast %27 : vector<1x36x128xbf16> to vector<36x128xbf16>
    %cst_15 = arith.constant dense<0.000000e+00> : vector<128x128xf32>
    %29 = tpu.matmul %26, %28, %cst_15 {dimension_numbers = #tpu.dot_dimension_numbers<[1], [0], [0], [1], [0, 0, 1, 1], [], []>} : vector<128x36xbf16>, vector<36x128xbf16>, vector<128x128xf32> -> vector<128x128xf32>
    %30 = arith.addf %24, %29 : vector<128x128xf32>
    %31 = vector.extract_strided_slice %3 {offsets = [1, 1, 0], sizes = [8, 16, 36], strides = [1, 1, 1]} : vector<10x18x36xbf16> to vector<8x16x36xbf16>
    %32 = vector.shape_cast %31 : vector<8x16x36xbf16> to vector<128x36xbf16>
    %c4 = arith.constant 4 : index
    %c0_16 = arith.constant 0 : index
    %c0_17 = arith.constant 0 : index
    %33 = vector.load %arg3[%c4, %c0_16, %c0_17] : memref<9x36x128xbf16, #tpu.memory_space<vmem>>, vector<1x36x128xbf16>
    %34 = vector.shape_cast %33 : vector<1x36x128xbf16> to vector<36x128xbf16>
    %cst_18 = arith.constant dense<0.000000e+00> : vector<128x128xf32>
    %35 = tpu.matmul %32, %34, %cst_18 {dimension_numbers = #tpu.dot_dimension_numbers<[1], [0], [0], [1], [0, 0, 1, 1], [], []>} : vector<128x36xbf16>, vector<36x128xbf16>, vector<128x128xf32> -> vector<128x128xf32>
    %36 = arith.addf %30, %35 : vector<128x128xf32>
    %37 = vector.extract_strided_slice %3 {offsets = [1, 2, 0], sizes = [8, 16, 36], strides = [1, 1, 1]} : vector<10x18x36xbf16> to vector<8x16x36xbf16>
    %38 = vector.shape_cast %37 : vector<8x16x36xbf16> to vector<128x36xbf16>
    %c5 = arith.constant 5 : index
    %c0_19 = arith.constant 0 : index
    %c0_20 = arith.constant 0 : index
    %39 = vector.load %arg3[%c5, %c0_19, %c0_20] : memref<9x36x128xbf16, #tpu.memory_space<vmem>>, vector<1x36x128xbf16>
    %40 = vector.shape_cast %39 : vector<1x36x128xbf16> to vector<36x128xbf16>
    %cst_21 = arith.constant dense<0.000000e+00> : vector<128x128xf32>
    %41 = tpu.matmul %38, %40, %cst_21 {dimension_numbers = #tpu.dot_dimension_numbers<[1], [0], [0], [1], [0, 0, 1, 1], [], []>} : vector<128x36xbf16>, vector<36x128xbf16>, vector<128x128xf32> -> vector<128x128xf32>
    %42 = arith.addf %36, %41 : vector<128x128xf32>
    %43 = vector.extract_strided_slice %3 {offsets = [2, 0, 0], sizes = [8, 16, 36], strides = [1, 1, 1]} : vector<10x18x36xbf16> to vector<8x16x36xbf16>
    %44 = vector.shape_cast %43 : vector<8x16x36xbf16> to vector<128x36xbf16>
    %c6 = arith.constant 6 : index
    %c0_22 = arith.constant 0 : index
    %c0_23 = arith.constant 0 : index
    %45 = vector.load %arg3[%c6, %c0_22, %c0_23] : memref<9x36x128xbf16, #tpu.memory_space<vmem>>, vector<1x36x128xbf16>
    %46 = vector.shape_cast %45 : vector<1x36x128xbf16> to vector<36x128xbf16>
    %cst_24 = arith.constant dense<0.000000e+00> : vector<128x128xf32>
    %47 = tpu.matmul %44, %46, %cst_24 {dimension_numbers = #tpu.dot_dimension_numbers<[1], [0], [0], [1], [0, 0, 1, 1], [], []>} : vector<128x36xbf16>, vector<36x128xbf16>, vector<128x128xf32> -> vector<128x128xf32>
    %48 = arith.addf %42, %47 : vector<128x128xf32>
    %49 = vector.extract_strided_slice %3 {offsets = [2, 1, 0], sizes = [8, 16, 36], strides = [1, 1, 1]} : vector<10x18x36xbf16> to vector<8x16x36xbf16>
    %50 = vector.shape_cast %49 : vector<8x16x36xbf16> to vector<128x36xbf16>
    %c7 = arith.constant 7 : index
    %c0_25 = arith.constant 0 : index
    %c0_26 = arith.constant 0 : index
    %51 = vector.load %arg3[%c7, %c0_25, %c0_26] : memref<9x36x128xbf16, #tpu.memory_space<vmem>>, vector<1x36x128xbf16>
    %52 = vector.shape_cast %51 : vector<1x36x128xbf16> to vector<36x128xbf16>
    %cst_27 = arith.constant dense<0.000000e+00> : vector<128x128xf32>
    %53 = tpu.matmul %50, %52, %cst_27 {dimension_numbers = #tpu.dot_dimension_numbers<[1], [0], [0], [1], [0, 0, 1, 1], [], []>} : vector<128x36xbf16>, vector<36x128xbf16>, vector<128x128xf32> -> vector<128x128xf32>
    %54 = arith.addf %48, %53 : vector<128x128xf32>
    %55 = vector.extract_strided_slice %3 {offsets = [2, 2, 0], sizes = [8, 16, 36], strides = [1, 1, 1]} : vector<10x18x36xbf16> to vector<8x16x36xbf16>
    %56 = vector.shape_cast %55 : vector<8x16x36xbf16> to vector<128x36xbf16>
    %c8 = arith.constant 8 : index
    %c0_28 = arith.constant 0 : index
    %c0_29 = arith.constant 0 : index
    %57 = vector.load %arg3[%c8, %c0_28, %c0_29] : memref<9x36x128xbf16, #tpu.memory_space<vmem>>, vector<1x36x128xbf16>
    %58 = vector.shape_cast %57 : vector<1x36x128xbf16> to vector<36x128xbf16>
    %cst_30 = arith.constant dense<0.000000e+00> : vector<128x128xf32>
    %59 = tpu.matmul %56, %58, %cst_30 {dimension_numbers = #tpu.dot_dimension_numbers<[1], [0], [0], [1], [0, 0, 1, 1], [], []>} : vector<128x36xbf16>, vector<36x128xbf16>, vector<128x128xf32> -> vector<128x128xf32>
    %60 = arith.addf %54, %59 : vector<128x128xf32>
    %61 = vector.extract_strided_slice %60 {offsets = [0, 0], sizes = [128, 96], strides = [1, 1]} : vector<128x128xf32> to vector<128x96xf32>
    %cst_31 = arith.constant 2.000000e-01 : f32
    %62 = vector.broadcast %cst_31 : f32 to vector<128x96xf32>
    %63 = arith.mulf %61, %62 : vector<128x96xf32>
    %cst_32 = arith.constant 5.000000e-01 : f32
    %64 = vector.broadcast %cst_32 : f32 to vector<128x96xf32>
    %65 = arith.addf %63, %64 : vector<128x96xf32>
    %cst_33 = arith.constant 0.000000e+00 : f32
    %cst_34 = arith.constant 1.000000e+00 : f32
    %66 = vector.broadcast %cst_33 : f32 to vector<128x96xf32>
    %67 = arith.maximumf %66, %65 : vector<128x96xf32>
    %68 = vector.broadcast %cst_34 : f32 to vector<128x96xf32>
    %69 = arith.minimumf %68, %67 : vector<128x96xf32>
    %70 = vector.extract_strided_slice %69 {offsets = [0, 0], sizes = [128, 32], strides = [1, 1]} : vector<128x96xf32> to vector<128x32xf32>
    %71 = vector.extract_strided_slice %69 {offsets = [0, 32], sizes = [128, 32], strides = [1, 1]} : vector<128x96xf32> to vector<128x32xf32>
    %72 = vector.extract_strided_slice %69 {offsets = [0, 64], sizes = [128, 32], strides = [1, 1]} : vector<128x96xf32> to vector<128x32xf32>
    %73 = vector.extract_strided_slice %60 {offsets = [0, 96], sizes = [128, 32], strides = [1, 1]} : vector<128x128xf32> to vector<128x32xf32>
    %74 = math.tanh %73 : vector<128x32xf32>
    %c0_35 = arith.constant 0 : index
    %c0_36 = arith.constant 0 : index
    %75 = vector.load %arg5[%c0_35, %c0_36] : memref<128x32xf32, #tpu.memory_space<vmem>>, vector<128x32xf32>
    %76 = arith.mulf %71, %75 : vector<128x32xf32>
    %77 = arith.mulf %70, %74 : vector<128x32xf32>
    %78 = arith.addf %76, %77 : vector<128x32xf32>
    %79 = math.tanh %78 : vector<128x32xf32>
    %80 = arith.mulf %72, %79 : vector<128x32xf32>
    %c0_37 = arith.constant 0 : index
    %c0_38 = arith.constant 0 : index
    %81 = vector.load %arg6[%c0_37, %c0_38] : memref<128x128xf32, #tpu.memory_space<vmem>>, vector<128x32xf32>
    tpu.vector_store %arg6[%c0_37, %c0_38], %80 {strides = array<i32>} : memref<128x128xf32, #tpu.memory_space<vmem>>, vector<128x32xf32>,
    %c0_39 = arith.constant 0 : index
    %c32 = arith.constant 32 : index
    %82 = vector.load %arg6[%c0_39, %c32] : memref<128x128xf32, #tpu.memory_space<vmem>>, vector<128x32xf32>
    tpu.vector_store %arg6[%c0_39, %c32], %78 {strides = array<i32>} : memref<128x128xf32, #tpu.memory_space<vmem>>, vector<128x32xf32>,
    return
  }
  func.func @transform_0(%arg0: i32, %arg1: i32) -> (i32, i32, i32, i32) {
    %c0_i32 = arith.constant 0 : i32
    %c0_i32_0 = arith.constant 0 : i32
    %c0_i32_1 = arith.constant 0 : i32
    %c0_i32_2 = arith.constant 0 : i32
    return %arg0, %c0_i32, %c0_i32_0, %c0_i32_1 : i32, i32, i32, i32
  }
  func.func @transform_1(%arg0: i32, %arg1: i32) -> (i32, i32, i32) {
    %c0_i32 = arith.constant 0 : i32
    %c0_i32_0 = arith.constant 0 : i32
    %c0_i32_1 = arith.constant 0 : i32
    %c0_i32_2 = arith.constant 0 : i32
    return %c0_i32, %c0_i32_0, %c0_i32_1 : i32, i32, i32
  }
  func.func @transform_2(%arg0: i32, %arg1: i32) -> (i32, i32) {
    %c0_i32 = arith.constant 0 : i32
    %c0_i32_0 = arith.constant 0 : i32
    %c0_i32_1 = arith.constant 0 : i32
    return %c0_i32, %c0_i32_0 : i32, i32
  }
  func.func @transform_3(%arg0: i32, %arg1: i32) -> (i32, i32) {
    %c2_i32 = arith.constant 2 : i32
    %0 = arith.muli %arg0, %c2_i32 : i32
    %1 = arith.addi %0, %arg1 : i32
    %c0_i32 = arith.constant 0 : i32
    %c0_i32_0 = arith.constant 0 : i32
    return %1, %c0_i32 : i32, i32
  }
  func.func @transform_4(%arg0: i32, %arg1: i32) -> (i32, i32) {
    %c2_i32 = arith.constant 2 : i32
    %0 = arith.muli %arg0, %c2_i32 : i32
    %1 = arith.addi %0, %arg1 : i32
    %c0_i32 = arith.constant 0 : i32
    %c0_i32_0 = arith.constant 0 : i32
    return %1, %c0_i32 : i32, i32
  }
}

</mosaic_0001>

<bundles_post_ra>
// kernel: convlstm_cell_forward.1
= control target key start
LH: loop header
LB: loop body
LE: loop exit
PB: predicated region body
PF: predicated region fallthrough
CT: control target
= control target key end

     0   :  { %s3403_s15 = smov 0   ;;  %s3405_s16 = smov 0   ;;  %s4722_s0 = inlined_call_operand.vmem [shape: bf16[2,18,18,36], index: 0, kind: input, shape index: {}]   ;;  %s4723_s1 = inlined_call_operand.vmem [shape: bf16[9,36,128], index: 1, kind: input, shape index: {}]   ;;  %s4724_s2 = inlined_call_operand.vmem [shape: f32[1,128], index: 2, kind: input, shape index: {}]   ;;  %s4725_s3 = inlined_call_operand.vmem [shape: f32[512,32], index: 3, kind: input, shape index: {}]   ;;  %s4726_s4 = inlined_call_operand.vmem [shape: f32[512,128], index: 4, kind: output, shape index: {}]  }
   0x1   :  { %s3407_s17 = smov 0   ;;  %s3409_s18 = smov 0  }
   0x2   :  { %s3411_s19 = smov 0  }
   0x3 LB: > { %s23_s20 = sadd.s32 1, %s3366_s17  ;;  %s26_s21 = sadd.s32 1, %s3370_s18  ;;  %s3374_s19 = sphi %s3411_s19, %s14_s19   ;;  %s3370_s18 = sphi %s3409_s18, %s4782_s18   ;;  %s3366_s17 = sphi %s3407_s17, %s4781_s17   ;;  %s3362_s16 = sphi %s3405_s16, %s4780_s16   ;;  %s3358_s15 = sphi %s3403_s15, %s4779_s15  }
   0x4   : > { %p24_p0 = scmp.ge.s32.totalorder %s23_s20, 2  ;;  %p2685_p1 = scmp.ge.s32.totalorder %s3374_s19, 1 }
   0x5   : > { %p197_p2 = scmp.lt.s32.totalorder %s3374_s19, 5 }
   0x6   : > { %s4784_s20 = smov (%p24_p0, %s23_s20), 0  ;;  %s4786_s21 = smov (!%p24_p0, %s26_s21), %s3370_s18 }
   0x7   : > { %p198_p3 = pnand %p2685_p1, %p197_p2  ;;  %p28_p4 = scmp.ge.s32.totalorder %s4786_s21, 2 }
   0x9   : > { %s4788_s21 = smov (%p28_p4, %s4786_s21), 0  ;;  %201 = sbr.rel (%p198_p3) target bundleno = 880 (0x370), region = 36 }
   0xe   : > { %v3235_v0 = vld [vmem:[%s4723_s1 + $0x10] ss:$0 sps:$4 sm:$0x33]   ;;  %vm384_vm0 = vcmask 1041408   ;;  %v3236_v1 = vld [vmem:[%s4723_s1 + $0x8] sm:$0xff]   ;;  %p232_p5 = scmp.lt.s32.totalorder %s3362_s16, 1 }
   0xf   : > { %3182 = vmatprep.subr.msk.bf16.mxu0 %vm384_vm0, %v3235_v0  ;;  %3183 = vmatprep.subr.msk.bf16.mxu1 %vm384_vm0, %v3235_v0  ;;  %v386_v2 = vsel %vm384_vm0, %v3235_v0, 0  ;;  %v3237_v3 = vld [vmem:[%s4723_s1] sm:$0xff]   ;;  %s2878_s29 = smul.u32 96, %s3358_s15  ;;  %v3243_v5 = vld [vmem:[%s4723_s1 + $0x38] ss:$0 sps:$4 sm:$0x33]  }
  0x10   : > { %2979 = vmatpush3.bf16.msra.mxu0 %v386_v2  ;;  %3179 = vmatpush3.bf16.msra.mxu1 %v386_v2  ;;  %s233_s28 = scalar_select %p232_p5, %s3362_s16, 1  ;;  %v3242_v4 = vld [vmem:[%s4723_s1 + $0x24] ss:$0 sps:$4 sm:$0x33]   ;;  %vm359_vm1 = vcmask 293888   ;;  %v1018_v7 = vsel %vm384_vm0, %v3243_v5, 0 }
  0x11   : > { %2980 = vmatprep.subr.bf16.mxu0 %v3236_v1  ;;  %3177 = vmatprep.subr.bf16.mxu1 %v3236_v1  ;;  %v3464_v6 = vsel %vm384_vm0, %v3242_v4, 0  ;;  %v3249_v46 = vld [vmem:[%s4723_s1 + $0x30] sm:$0xff]   ;;  %vm889_vm2 = vcmask 1042432   ;;  %v3244_v56 = vld [vmem:[%s4723_s1 + $0x1c] sm:$0xff]   ;;  %vm501_vm3 = vsmask.f32 3328 }
  0x12   : > { %s3192_s6 = smul.u32 216, %s233_s28  ;;  %vm502_vm4 = vsmask.f32 7440  ;;  %vm890_vm5 = vcmask 1046532   ;;  %s3377_s8 = smov 64   ;;  %vm2555_vm8 = vcmask 261120  }
  0x13   : > { %vm3634_vm6 = vmor %vm501_vm3, %vm502_vm4  ;;  %vm2572_vm9 = vcmask 523520  }
  0x14   : > { %2981 = vmatpush3.bf16.msra.mxu0 %v3236_v1  ;;  %3180 = vmatpush3.bf16.msra.mxu1 %v3236_v1  ;;  %s236_s11 = scalar_lea.vmem %s4722_s0, %s3192_s6  ;;  %vm3650_vm7 = vmor %vm889_vm2, %vm890_vm5 }
  0x15   : > { %2982 = vmatprep.subr.bf16.mxu0 %v3237_v3  ;;  %3178 = vmatprep.subr.bf16.mxu1 %v3237_v3  ;;  %s3461_s12 = scalar_lea.vmem %s236_s11, %s2878_s29  ;;  %s2687_s11 = sshll.u32 %s3362_s16, 1 }
  0x16   : > { %v3468_v8 = vld [vmem:[%s3461_s12] sm:$0xf]  ;;  %v3471_v9 = vld [vmem:[%s3461_s12 + $0x4] sm:$0xf]  ;;  %v3474_v10 = vld [vmem:[%s3461_s12 + $0x30] sm:$0xf]  ;;  %s238_s13 = sadd.s32 %s3358_s15, %s2687_s11 }
  0x17   : > { %v2697_v11 = vcombine.low %v3468_v8, %v3471_v9  ;;  %v505_v12 = vshrl.u32 %v3468_v8, 16  ;;  %v508_v13 = vshll.u32 %v3468_v8, 16  ;;  %v514_v14 = vshll.u32 %v3471_v9, 16  ;;  %v3482_v15 = vld [vmem:[%s3461_s12 + $0x34] sm:$0xf]  ;;  %s2688_s14 = sshll.u32 %s238_s13, 4 }
  0x18   : > { %2983 = vmatpush3.bf16.msra.mxu0 %v3237_v3  ;;  %3181 = vmatpush3.bf16.msra.mxu1 %v3237_v3  ;;  %v518_v16 = vshrl.u32 %v3471_v9, 16  ;;  %v2740_v17 = vrot.slane %v3468_v8, 9  ;;  %v894_v18 = vrot.slane %v3471_v9, 5  ;;  %v3489_v19 = vcombine.low %v3474_v10, %v3482_v15  ;;  %v3492_v20 = vld [vmem:[%s3461_s12 + $0xc] sm:$0xf]  ;;  %p240_p6 = scmp.lt.s32.totalorder %s2688_s14, 63 }
  0x19   : > { %2984 = vmatprep.mubr.msk.bf16.mxu0 %vm359_vm1, %v2697_v11  ;;  %v507_v21 = vrot.slane %v505_v12, 4  ;;  %v510_v22 = vrot.slane %v508_v13, 5  ;;  %v3495_v23 = vrot.slane %v514_v14, 5  ;;  %v601_v24 = vshrl.u32 %v3474_v10, 16  ;;  %v3499_v25 = vld [vmem:[%s3461_s12 + $0x10] sm:$0xf]  ;;  %3184 = vmatprep.subr.msk.bf16.mxu1 %vm384_vm0, %v3242_v4 }
  0x1a   : > { %v520_v26 = vrot.slane %v518_v16, 4  ;;  %v3504_v27 = vrot.slane %v894_v18, 4  ;;  %2992 = vmatprep.mubr.msk.bf16.mxu1 %vm359_vm1, %v3489_v19  ;;  %v604_v28 = vshll.u32 %v3474_v10, 16  ;;  %v610_v29 = vshll.u32 %v3482_v15, 16  ;;  %v3511_v30 = vld [vmem:[%s3461_s12 + $0x3c] sm:$0xf]  ;;  %3185 = vmatprep.subr.msk.bf16.mxu0 %vm384_vm0, %v3243_v5 }
  0x1b   : > { %v511_v31 = vor.u32 %v510_v22, %v507_v21  ;;  %v3514_v32 = vrot.slane %v601_v24, 4  ;;  %v614_v33 = vshrl.u32 %v3482_v15, 16  ;;  %v2744_v34 = vrot.slane %v3474_v10, 9  ;;  %v3519_v35 = vld [vmem:[%s3461_s12 + $0x40] sm:$0xf]  ;;  %v3251_v4 = vld [vmem:[%s4723_s1 + $0x28] sm:$0xff]  }
  0x1c   : > { %v521_v36 = vor.u32 %v520_v26, %v3495_v23  ;;  %v3522_v37 = vrot.slane %v604_v28, 5  ;;  %v3524_v38 = vrot.slane %v610_v29, 5  ;;  %v922_v39 = vrot.slane %v3482_v15, 5  ;;  %v3528_v40 = vld [vmem:[%s3461_s12 + $0x18] sm:$0xf]  ;;  %s4790_s14 = smov (!%p240_p6, %s2688_s14), 63 }
  0x1d   : > { %v3530_v41 = vrot.slane %v511_v31, 4  ;;  %v3532_v42 = vrot.slane %v614_v33, 4  ;;  %v3536_v43 = vcombine.low %v3492_v20, %v3499_v25  ;;  %v529_v44 = vshrl.u32 %v3492_v20, 16  ;;  %v3540_v45 = vld [vmem:[%s3461_s12 + $0x1c] sm:$0xf]  ;;  %v3250_v24 = vld [vmem:[%s4723_s1 + $0x14] sm:$0xff]  }
  0x1e   : > { %v3545_v47 = vrot.slane %v521_v36, 4  ;;  %v532_v48 = vshll.u32 %v3492_v20, 16  ;;  %v538_v49 = vshll.u32 %v3499_v25, 16  ;;  %v542_v50 = vshrl.u32 %v3499_v25, 16  ;;  %v3551_v51 = vld [vmem:[%s3461_s12 + $0x48] sm:$0xf] }
  0x1f   : > { %2985 = vmatmul.mubr.msk.bf16.vlgmr.msra.gmra.mxu0 %vm359_vm1, %v3536_v43  ;;  %v531_v52 = vrot.slane %v529_v44, 4  ;;  %v2741_v53 = vrot.slane %v3492_v20, 9  ;;  %v901_v54 = vrot.slane %v3499_v25, 5  ;;  %v3559_v55 = vcombine.low %v3511_v30, %v3519_v35  ;;  %v3565_v57 = vld [vmem:[%s3461_s12 + $0x4c] sm:$0xf]  ;;  %s2689_s15 = sshll.u32 %s4790_s14, 3 }
  0x20   : > { %v534_v58 = vrot.slane %v532_v48, 5  ;;  %v3567_v59 = vrot.slane %v538_v49, 5  ;;  %v544_v60 = vrot.slane %v542_v50, 4  ;;  %v625_v61 = vshrl.u32 %v3511_v30, 16  ;;  %3023 = vmatpush3.bf16.msra.mxu0 %v1018_v7  ;;  %v3571_v62 = vld [vmem:[%s3461_s12 + $0x24] sm:$0xf]  ;;  %s4003_s23 = scalar_lea.vmem %s4725_s3, %s2689_s15  ;;  %s4625_s11 = scalar_lea.vmem %s4726_s4, %s2689_s15 }
  0x21   : > { %v3575_v63 = vrot.slane %v901_v54, 4  ;;  %2993 = vmatmul.mubr.msk.bf16.vlgmr.msra.gmra.mxu1 %vm359_vm1, %v3559_v55  ;;  %v628_v0 = vshll.u32 %v3511_v30, 16  ;;  %v638_v1 = vshrl.u32 %v3519_v35, 16  ;;  %v3583_v2 = vcombine.low %v3528_v40, %v3540_v45  ;;  %v3586_v3 = vld [vmem:[%s3461_s12 + $0x28] sm:$0xf]  ;;  %3024 = vmatprep.subr.bf16.mxu0 %v3249_v46 }
  0x22   : > { %v535_v5 = vor.u32 %v534_v58, %v531_v52  ;;  %v545_v7 = vor.u32 %v544_v60, %v3567_v59  ;;  %3001 = vmatpush3.bf16.msra.mxu1 %v3464_v6  ;;  %v553_v11 = vshrl.u32 %v3528_v40, 16  ;;  %v556_v12 = vshll.u32 %v3528_v40, 16  ;;  %v3596_v13 = vld [vmem:[%s3461_s12 + $0x54] sm:$0xf]  ;;  %v3599_v14 = vld [vmem:[%s3461_s12 + $0x58] sm:$0xf] }
  0x23   : > { %3002 = vmatprep.subr.bf16.mxu1 %v3244_v56  ;;  %2988 = vmatprep.mubr.msk.bf16.mxu0 %vm359_vm1, %v3583_v2  ;;  %v566_v16 = vshrl.u32 %v3540_v45, 16  ;;  %v3606_v21 = vcombine.low %v3551_v51, %v3565_v57  ;;  %v264_v26 = vld [vmem:[%s3461_s12 + $0x8] sm:$0x1]  ;;  %v3617_v33 = vcombine.low %v3571_v62, %v3586_v3  ;;  %v267_v36 = vld [vmem:[%s3461_s12 + $0x14] sm:$0x1]  ;;  %v577_v44 = vshrl.u32 %v3571_v62, 16 }
  0x24   : > { %v536_v28 = vrot.slane %v535_v5, 4  ;;  %v546_v29 = vrot.slane %v545_v7, 4  ;;  %3025 = vmatpush3.bf16.msra.mxu0 %v3249_v46  ;;  %v580_v48 = vshll.u32 %v3571_v62, 16  ;;  %v590_v49 = vshrl.u32 %v3586_v3, 16  ;;  %v2139_v7 = vld [vmem:[%s4003_s23] sm:$0xff] }
  0x25   : > { %2996 = vmatprep.mubr.msk.bf16.mxu1 %vm359_vm1, %v3606_v21  ;;  %v3627_v50 = vcombine.low %v3596_v13, %v3599_v14  ;;  %3026 = vmatprep.subr.bf16.mxu0 %v3251_v4  ;;  %v524_v60 = vshll.u32 %v264_v26, 16  ;;  %v897_v5 = vrot.slane %v264_v26, 5  ;;  %v904_v52 = vrot.slane %v267_v36, 5  ;;  %v3252_v58 = vld [vmem:[%s4723_s1 + $0x4c] ss:$0 sps:$4 sm:$0x33]  }
  0x26   : > { %3003 = vmatpush3.bf16.msra.mxu1 %v3244_v56  ;;  %v548_v56 = vshll.u32 %v267_v36, 16  ;;  %v555_v46 = vrot.slane %v553_v11, 4  ;;  %v607_v31 = vor.u32 %v3522_v37, %v3514_v32  ;;  %v541_v11 = vsel %vm3634_vm6, %v536_v28, %v3567_v59  ;;  %v3253_v22 = vld [vmem:[%s4723_s1 + $0x60] ss:$0 sps:$4 sm:$0x33]  }
  0x27   : > { %2989 = vmatmul.mubr.msk.bf16.gmra.mxu0 %vm359_vm1, %v3617_v33  ;;  %3004 = vmatprep.subr.bf16.mxu1 %v3250_v24  ;;  %v526_v26 = vrot.slane %v524_v60, 5  ;;  %v617_v6 = vor.u32 %v3532_v42, %v3524_v38  ;;  %v902_v28 = vsel %vm3650_vm7, %v2741_v53, %v901_v54  ;;  %v558_v54 = vrot.slane %v556_v12, 5  ;;  %v3757_v32 = vld [vmem:[%s4723_s1 + $0x88] ss:$0 sps:$4 sm:$0x33]  }
  0x28   : > { %3027 = vmatpush3.bf16.msra.mxu0 %v3251_v4  ;;  %v517_v4 = vsel %vm3634_vm6, %v3530_v41, %v3495_v23  ;;  %v895_v23 = vsel %vm3650_vm7, %v2740_v17, %v894_v18  ;;  %v898_v41 = vsel %vm3650_vm7, %v3504_v27, %v897_v5  ;;  %v550_v59 = vrot.slane %v548_v56, 5  ;;  %v273_v56 = vld [vmem:[%s3461_s12 + $0x2c] sm:$0x1]  ;;  %v3266_v36 = vld [vmem:[%s4723_s1 + $0xb0] ss:$0 sps:$4 sm:$0x33]  }
  0x29   : > { %2997 = vmatmul.mubr.msk.bf16.gmra.mxu1 %vm359_vm1, %v3627_v50  ;;  %v527_v8 = vsel %vm3634_vm6, %v3545_v47, %v526_v26  ;;  %v2753_v9 = vcombine.low %v895_v23, %v898_v41  ;;  %v905_v17 = vsel %vm3650_vm7, %v3575_v63, %v904_v52  ;;  %v1163_v18 = vsel %vm384_vm0, %v3252_v58, 0  ;;  %3187 = vmatprep.subr.msk.bf16.mxu0 %vm384_vm0, %v3253_v22 }
  0x2a   : > { %3005 = vmatpush3.bf16.msra.mxu1 %v3250_v24  ;;  %v270_v24 = vld [vmem:[%s3461_s12 + $0x20] sm:$0x1]  ;;  %v2721_v20 = vcombine.low %v517_v4, %v527_v8  ;;  %v551_v25 = vsel %vm3634_vm6, %v546_v29, %v550_v59  ;;  %v3689_v27 = vcombine.low %v902_v28, %v905_v17  ;;  %v1330_v47 = vsel %vm384_vm0, %v3253_v22, 0 }
  0x2b   : > { %3186 = vmatprep.subr.msk.bf16.mxu1 %vm384_vm0, %v3252_v58  ;;  %3028 = vmatprep.mubr.msk.bf16.mxu0 %vm359_vm1, %v2753_v9  ;;  %v3693_v53 = vcombine.low %v541_v11, %v551_v25  ;;  %v562_v63 = vshll.u32 %v3540_v45, 16  ;;  %v568_v52 = vrot.slane %v566_v16, 4  ;;  %v3255_v58 = vld [vmem:[%s4723_s1 + $0x58] sm:$0xff]   ;;  %v572_v29 = vshll.u32 %v270_v24, 16  ;;  %v3254_v11 = vld [vmem:[%s4723_s1 + $0x44] sm:$0xff]  }
  0x2c   : > { %3006 = vmatprep.mubr.msk.bf16.mxu1 %vm359_vm1, %v2721_v20  ;;  %v2742_v60 = vrot.slane %v3528_v40, 9  ;;  %v908_v22 = vrot.slane %v3540_v45, 5  ;;  %v911_v5 = vrot.slane %v270_v24, 5  ;;  %v559_v12 = vor.u32 %v558_v54, %v555_v46  ;;  %v3256_v20 = vld [vmem:[%s4723_s1 + $0x3c] sm:$0xff]  }
  0x2d   : > { %v564_v4 = vrot.slane %v562_v63, 5  ;;  %v579_v26 = vrot.slane %v577_v44, 4  ;;  %v582_v16 = vrot.slane %v580_v48, 5  ;;  %v574_v23 = vrot.slane %v572_v29, 5  ;;  %v3257_v48 = vld [vmem:[%s4723_s1 + $0x50] sm:$0xff]  }
  0x2e   : > { %v909_v40 = vsel %vm3650_vm7, %v2742_v60, %v908_v22  ;;  %v910_v41 = vrot.slane %v908_v22, 4  ;;  %v586_v45 = vshll.u32 %v3586_v3, 16  ;;  %v560_v59 = vrot.slane %v559_v12, 4 }
  0x2f   : > { %3029 = vmatmul.mubr.msk.bf16.vlgmr.msra.gmra.mxu0 %vm359_vm1, %v3689_v27  ;;  %v569_v46 = vor.u32 %v568_v52, %v564_v4  ;;  %v583_v28 = vor.u32 %v582_v16, %v579_v26  ;;  %v592_v44 = vrot.slane %v590_v49, 4  ;;  %v596_v9 = vshll.u32 %v273_v56, 16  ;;  %v3752_v16 = vld [vmem:[%s4723_s1 + $0x74] ss:$0 sps:$4 sm:$0x33]  }
  0x30   : > { %3067 = vmatpush3.bf16.msra.mxu0 %v1330_v47  ;;  %v912_v24 = vsel %vm3650_vm7, %v910_v41, %v911_v5  ;;  %v588_v8 = vrot.slane %v586_v45, 5  ;;  %v2743_v17 = vrot.slane %v3571_v62, 9  ;;  %v565_v49 = vsel %vm3634_vm6, %v560_v59, %v564_v4  ;;  %v276_v62 = vld [vmem:[%s3461_s12 + $0x38] sm:$0x1] }
  0x31   : > { %3007 = vmatmul.mubr.msk.bf16.vlgmr.msra.gmra.mxu1 %vm359_vm1, %v3693_v53  ;;  %3068 = vmatprep.subr.bf16.mxu0 %v3255_v58  ;;  %v570_v25 = vrot.slane %v569_v46, 4  ;;  %v3728_v47 = vcombine.low %v909_v40, %v912_v24  ;;  %v598_v63 = vrot.slane %v596_v9, 5  ;;  %v915_v52 = vrot.slane %v3586_v3, 5 }
  0x32   : > { %3045 = vmatpush3.bf16.msra.mxu1 %v1163_v18  ;;  %v584_v18 = vrot.slane %v583_v28, 4  ;;  %v593_v54 = vor.u32 %v592_v44, %v588_v8  ;;  %v918_v29 = vrot.slane %v273_v56, 5  ;;  %v608_v5 = vrot.slane %v607_v31, 4  ;;  %v279_v56 = vld [vmem:[%s3461_s12 + $0x44] sm:$0x1] }
  0x33   : > { %3046 = vmatprep.subr.bf16.mxu1 %v3254_v11  ;;  %v575_v60 = vsel %vm3634_vm6, %v570_v25, %v574_v23  ;;  %3032 = vmatprep.mubr.msk.bf16.mxu0 %vm359_vm1, %v3728_v47  ;;  %v618_v3 = vrot.slane %v617_v6, 4  ;;  %v916_v4 = vsel %vm3650_vm7, %v2743_v17, %v915_v52  ;;  %v917_v26 = vrot.slane %v915_v52, 4 }
  0x34   : > { %3069 = vmatpush3.bf16.msra.mxu0 %v3255_v58  ;;  %v589_v22 = vsel %vm3634_vm6, %v584_v18, %v588_v8  ;;  %v3745_v58 = vcombine.low %v565_v49, %v575_v60  ;;  %v594_v12 = vrot.slane %v593_v54, 4  ;;  %v613_v37 = vsel %vm3634_vm6, %v608_v5, %v3524_v38 }
  0x35   : > { %3070 = vmatprep.subr.bf16.mxu0 %v3257_v48  ;;  %v620_v42 = vshll.u32 %v276_v62, 16  ;;  %v923_v6 = vsel %vm3650_vm7, %v2744_v34, %v922_v39  ;;  %v924_v31 = vrot.slane %v922_v39, 4  ;;  %v919_v38 = vsel %vm3650_vm7, %v917_v26, %v918_v29  ;;  %v285_v26 = vld [vmem:[%s3461_s12 + $0x5c] sm:$0x1] }
  0x36   : > { %3047 = vmatpush3.bf16.msra.mxu1 %v3254_v11  ;;  %3010 = vmatprep.mubr.msk.bf16.mxu1 %vm359_vm1, %v3745_v58  ;;  %v599_v11 = vsel %vm3634_vm6, %v594_v12, %v598_v63  ;;  %v925_v23 = vrot.slane %v276_v62, 5  ;;  %v627_v10 = vrot.slane %v625_v61, 4  ;;  %v3780_v15 = vcombine.low %v916_v4, %v919_v38 }
  0x37   : > { %3048 = vmatprep.subr.bf16.mxu1 %v3256_v20  ;;  %v3778_v40 = vcombine.low %v589_v22, %v599_v11  ;;  %v622_v34 = vrot.slane %v620_v42, 5  ;;  %v630_v39 = vrot.slane %v628_v0, 5  ;;  %v634_v45 = vshll.u32 %v3519_v35, 16 }
  0x38   : > { %3071 = vmatpush3.bf16.msra.mxu0 %v3257_v48  ;;  %v926_v41 = vsel %vm3650_vm7, %v924_v31, %v925_v23  ;;  %v640_v61 = vrot.slane %v638_v1, 4  ;;  %v644_v59 = vshll.u32 %v279_v56, 16  ;;  %v2745_v44 = vrot.slane %v3511_v30, 9  ;;  %v282_v48 = vld [vmem:[%s3461_s12 + $0x50] sm:$0x1] }
  0x39   : > { %3189 = vmatprep.subr.msk.bf16.mxu0 %vm384_vm0, %v3757_v32  ;;  %3011 = vmatmul.mubr.msk.bf16.gmra.mxu1 %vm359_vm1, %v3778_v40  ;;  %v623_v0 = vsel %vm3634_vm6, %v618_v3, %v622_v34  ;;  %v3797_v46 = vcombine.low %v923_v6, %v926_v41  ;;  %v631_v28 = vor.u32 %v630_v39, %v627_v10  ;;  %v636_v1 = vrot.slane %v634_v45, 5 }
  0x3a   : > { %3049 = vmatpush3.bf16.msra.mxu1 %v3256_v20  ;;  %3033 = vmatmul.mubr.msk.bf16.gmra.mxu0 %vm359_vm1, %v3780_v15  ;;  %v3801_v24 = vcombine.low %v613_v37, %v623_v0  ;;  %v646_v8 = vrot.slane %v644_v59, 5  ;;  %v929_v9 = vrot.slane %v3519_v35, 5  ;;  %v932_v20 = vrot.slane %v279_v56, 5 }
  0x3b   : > { %3188 = vmatprep.subr.msk.bf16.mxu1 %vm384_vm0, %v3752_v16  ;;  %3036 = vmatprep.mubr.msk.bf16.mxu0 %vm359_vm1, %v3797_v46  ;;  %v632_v17 = vrot.slane %v631_v28, 4  ;;  %v4731_v49 = vshrl.u32 %v3551_v51, 16  ;;  %v4732_v30 = vshll.u32 %v3551_v51, 16  ;;  %v641_v54 = vor.u32 %v640_v61, %v636_v1 }
  0x3c   : > { %3014 = vmatprep.mubr.msk.bf16.mxu1 %vm359_vm1, %v3801_v24  ;;  %v930_v35 = vsel %vm3650_vm7, %v2745_v44, %v929_v9  ;;  %v931_v63 = vrot.slane %v929_v9, 4  ;;  %v658_v52 = vshll.u32 %v3565_v57, 16  ;;  %v4733_v60 = vshrl.u32 %v3565_v57, 16 }
  0x3d   : > { %v651_v25 = vrot.slane %v4731_v49, 4  ;;  %v654_v18 = vrot.slane %v4732_v30, 5  ;;  %v637_v29 = vsel %vm3634_vm6, %v632_v17, %v636_v1  ;;  %v668_v5 = vshll.u32 %v282_v48, 16 }
  0x3e   : > { %v664_v22 = vrot.slane %v4733_v60, 4  ;;  %v642_v3 = vrot.slane %v641_v54, 4  ;;  %v933_v56 = vsel %vm3650_vm7, %v931_v63, %v932_v20  ;;  %v660_v12 = vrot.slane %v658_v52, 5 }
  0x3f   : > { %v655_v62 = vor.u32 %v654_v18, %v651_v25  ;;  %v2746_v4 = vrot.slane %v3551_v51, 9  ;;  %v3825_v37 = vcombine.low %v930_v35, %v933_v56  ;;  %v670_v6 = vrot.slane %v668_v5, 5  ;;  %v3879_v56 = vld [vmem:[%s3461_s12 + $0x64] sm:$0xf] }
  0x40   : > { %v936_v31 = vrot.slane %v3565_v57, 5  ;;  %v647_v11 = vsel %vm3634_vm6, %v642_v3, %v646_v8  ;;  %v665_v38 = vor.u32 %v664_v22, %v660_v12  ;;  %v939_v23 = vrot.slane %v282_v48, 5  ;;  %v3876_v3 = vld [vmem:[%s3461_s12 + $0x60] sm:$0xf] }
  0x41   : > { %v656_v42 = vrot.slane %v655_v62, 4  ;;  %v4734_v10 = vshrl.u32 %v3596_v13, 16  ;;  %v3832_v39 = vcombine.low %v637_v29, %v647_v11  ;;  %v4735_v61 = vshll.u32 %v3596_v13, 16 }
  0x42   : > { %3037 = vmatmul.mubr.msk.bf16.gmra.mxu0 %vm359_vm1, %v3825_v37  ;;  %v937_v41 = vsel %vm3650_vm7, %v2746_v4, %v936_v31  ;;  %v938_v57 = vrot.slane %v936_v31, 4  ;;  %v666_v45 = vrot.slane %v665_v38, 4  ;;  %v682_v0 = vshll.u32 %v3599_v14, 16  ;;  %v3895_v31 = vld [vmem:[%s3461_s12 + $0x70] sm:$0xf] }
  0x43   : > { %v675_v34 = vrot.slane %v4734_v10, 4  ;;  %v661_v51 = vsel %vm3634_vm6, %v656_v42, %v660_v12  ;;  %v678_v59 = vrot.slane %v4735_v61, 5  ;;  %v4736_v28 = vshrl.u32 %v3599_v14, 16  ;;  %3015 = vmatmul.mubr.msk.bf16.gmra.mxu1 %vm359_vm1, %v3832_v39  ;;  %v3882_v12 = vld [vmem:[%s3461_s12 + $0x68] sm:$0x1] }
  0x44   : > { %v940_v48 = vsel %vm3650_vm7, %v938_v57, %v939_v23  ;;  %v692_v1 = vshll.u32 %v285_v26, 16  ;;  %v2747_v8 = vrot.slane %v3596_v13, 9  ;;  %v943_v9 = vrot.slane %v3599_v14, 5  ;;  %v291_v38 = vld [vmem:[%s3461_s12 + $0x74] sm:$0x1] }
  0x45   : > { %v688_v44 = vrot.slane %v4736_v28, 4  ;;  %v671_v17 = vsel %vm3634_vm6, %v666_v45, %v670_v6  ;;  %v3853_v20 = vcombine.low %v937_v41, %v940_v48  ;;  %v679_v49 = vor.u32 %v678_v59, %v675_v34  ;;  %v3890_v6 = vld [vmem:[%s3461_s12 + $0x6c] sm:$0xf]  ;;  %v3261_v28 = vld [vmem:[%s4723_s1 + $0x80] sm:$0xff]   ;;  %s3376_s12 = smov 32  }
  0x46   : > { %v684_v25 = vrot.slane %v682_v0, 5  ;;  %v3855_v30 = vcombine.low %v661_v51, %v671_v17  ;;  %v694_v18 = vrot.slane %v692_v1, 5  ;;  %v945_v54 = vrot.slane %v943_v9, 4  ;;  %2171 = vrot.lane.b32.xlu0 %v2139_v7, %s3376_s12 }
  0x47   : > { %3040 = vmatprep.mubr.msk.bf16.mxu0 %vm359_vm1, %v3853_v20  ;;  %v680_v13 = vrot.slane %v679_v49, 4  ;;  %v944_v14 = vsel %vm3650_vm7, %v2747_v8, %v943_v9  ;;  %v946_v63 = vrot.slane %v285_v26, 5  ;;  %v2806_v4 = vrot.slane %v3876_v3, 9 }
  0x48   : > { %v689_v35 = vor.u32 %v688_v44, %v684_v25  ;;  %3018 = vmatprep.mubr.msk.bf16.mxu1 %vm359_vm1, %v3855_v30  ;;  %v1448_v26 = vrot.slane %v3879_v56, 5  ;;  %v1451_v42 = vrot.slane %v3882_v12, 5  ;;  %v1742_v11 = vshrl.u32 %v3890_v6, 16 }
  0x49   : > { %v685_v52 = vsel %vm3634_vm6, %v680_v13, %v684_v25  ;;  %v947_v62 = vsel %vm3650_vm7, %v945_v54, %v946_v63  ;;  %v1745_v10 = vshll.u32 %v3890_v6, 16  ;;  %v1755_v34 = vshrl.u32 %v3895_v31, 16 }
  0x4a   : > { %v690_v29 = vrot.slane %v689_v35, 4  ;;  %v3867_v60 = vcombine.low %v944_v14, %v947_v62  ;;  %v1450_v23 = vrot.slane %v1448_v26, 4  ;;  %v1481_v51 = vsel %vm384_vm0, %v3752_v16, 0 }
  0x4b   : > { %v1744_v41 = vrot.slane %v1742_v11, 4  ;;  %v1751_v57 = vshll.u32 %v3895_v31, 16  ;;  %v1747_v61 = vrot.slane %v1745_v10, 5  ;;  %v1757_v59 = vrot.slane %v1755_v34, 4 }
  0x4c   : > { %v695_v22 = vsel %vm3634_vm6, %v690_v29, %v694_v18  ;;  %3041 = vmatmul.mubr.msk.bf16.gmra.mxu0 %vm359_vm1, %v3867_v60  ;;  %v1452_v45 = vsel %vm3650_vm7, %v1450_v23, %v1451_v42  ;;  %v1626_v0 = vsel %vm384_vm0, %v3757_v32, 0  ;;  %v2858_v16 = vrot.slane %v3890_v6, 9  ;;  %v3260_v32 = vld [vmem:[%s4723_s1 + $0x6c] sm:$0xff]   ;;  %v3265_v34 = vld [vmem:[%s4723_s1 + $0x9c] ss:$0 sps:$4 sm:$0x33]  }
  0x4d   : > { %v3871_v5 = vcombine.low %v685_v52, %v695_v22  ;;  %3072 = vmatprep.mubr.msk.bf16.mxu0 %vm359_vm1, %v3693_v53  ;;  %v1449_v53 = vsel %vm3650_vm7, %v2806_v4, %v1448_v26  ;;  %v1753_v48 = vrot.slane %v1751_v57, 5  ;;  %v1279_v1 = vshrl.u32 %v3876_v3, 16  ;;  %v3264_v52 = vld [vmem:[%s4723_s1 + $0x78] sm:$0xff]   ;;  %v3262_v4 = vld [vmem:[%s4723_s1 + $0x64] sm:$0xff]  }
  0x4e   : > { %v3915_v44 = vcombine.low %v1449_v53, %v1452_v45  ;;  %v1282_v8 = vshll.u32 %v3876_v3, 16  ;;  %v1748_v9 = vor.u32 %v1747_v61, %v1744_v41  ;;  %v1911_v17 = vrot.slane %v3895_v31, 5 }
  0x4f   : > { %3019 = vmatmul.mubr.msk.bf16.gmra.mxu1 %vm359_vm1, %v3871_v5  ;;  %v1292_v49 = vshrl.u32 %v3879_v56, 16  ;;  %v1758_v25 = vor.u32 %v1757_v59, %v1753_v48  ;;  %v1914_v54 = vrot.slane %v291_v38, 5  ;;  %v1288_v13 = vshll.u32 %v3879_v56, 16 }
  0x50   : > { %3050 = vmatprep.mubr.msk.bf16.mxu1 %vm359_vm1, %v3536_v43  ;;  %v1761_v43 = vshll.u32 %v291_v38, 16  ;;  %v1749_v35 = vrot.slane %v1748_v9, 4  ;;  %v3932_v14 = vsel %vm3650_vm7, %v2858_v16, %v1911_v17  ;;  %v1913_v63 = vrot.slane %v1911_v17, 4  ;;  %v3271_v16 = vld [vmem:[%s4723_s1 + $0xa0] sm:$0xff]  }
  0x51   : > { %v1759_v29 = vrot.slane %v1758_v25, 4  ;;  %v1281_v26 = vrot.slane %v1279_v1, 4  ;;  %v1284_v38 = vrot.slane %v1282_v8, 5  ;;  %v1290_v53 = vrot.slane %v1288_v13, 5 }
  0x52   : > { %v1763_v18 = vrot.slane %v1761_v43, 5  ;;  %v1754_v62 = vsel %vm3634_vm6, %v1749_v35, %v1753_v48  ;;  %v3945_v22 = vsel %vm3650_vm7, %v1913_v63, %v1914_v54  ;;  %v1294_v23 = vrot.slane %v1292_v49, 4  ;;  %v3267_v48 = vld [vmem:[%s4723_s1 + $0x94] sm:$0xff]  }
  0x53   : > { %v2864_v11 = vcombine.low %v3932_v14, %v3945_v22  ;;  %v1298_v57 = vshll.u32 %v3882_v12, 16 }
  0x54   : > { %3073 = vmatmul.mubr.msk.bf16.vlgmr.msra.gmra.mxu0 %vm359_vm1, %v3745_v58  ;;  %v1764_v42 = vsel %vm3634_vm6, %v1759_v29, %v1763_v18  ;;  %v1295_v41 = vor.u32 %v1294_v23, %v1290_v53 }
  0x55   : > { %3111 = vmatpush3.bf16.msra.mxu0 %v1626_v0  ;;  %3076 = vmatprep.mubr.msk.bf16.mxu0 %vm359_vm1, %v3778_v40  ;;  %v3954_v10 = vcombine.low %v1754_v62, %v1764_v42  ;;  %v1300_v59 = vrot.slane %v1298_v57, 5 }
  0x56   : > { %3112 = vmatprep.subr.bf16.mxu0 %v3261_v28  ;;  %v1296_v61 = vrot.slane %v1295_v41, 4 }
  0x57   : > { %3051 = vmatmul.mubr.msk.bf16.vlgmr.msra.gmra.mxu1 %vm359_vm1, %v3583_v2 }
  0x58   : > { %3089 = vmatpush3.bf16.msra.mxu1 %v1481_v51  ;;  %3054 = vmatprep.mubr.msk.bf16.mxu1 %vm359_vm1, %v3617_v33  ;;  %v1285_v51 = vor.u32 %v1284_v38, %v1281_v26  ;;  %v1301_v43 = vsel %vm3634_vm6, %v1296_v61, %v1300_v59 }
  0x59   : > { %3090 = vmatprep.subr.bf16.mxu1 %v3260_v32  ;;  %3113 = vmatpush3.bf16.msra.mxu0 %v3261_v28  ;;  %v2777_v28 = vcombine.low %v3876_v3, %v3879_v56  ;;  %v1944_v3 = vsel %vm384_vm0, %v3266_v36, 0  ;;  %v3268_v56 = vld [vmem:[%s4723_s1 + $0xa8] sm:$0xff]  }
  0x5a   : > { %3114 = vmatprep.subr.bf16.mxu0 %v3264_v52  ;;  %v1286_v45 = vrot.slane %v1285_v51, 4 }
  0x5c   : > { %3091 = vmatpush3.bf16.msra.mxu1 %v3260_v32  ;;  %3077 = vmatmul.mubr.msk.bf16.gmra.mxu0 %vm359_vm1, %v3801_v24  ;;  %v1291_v12 = vsel %vm3634_vm6, %v1286_v45, %v1290_v53 }
  0x5d   : > { %3092 = vmatprep.subr.bf16.mxu1 %v3262_v4  ;;  %3080 = vmatprep.mubr.msk.bf16.mxu0 %vm359_vm1, %v3832_v39  ;;  %v2794_v0 = vcombine.low %v1291_v12, %v1301_v43 }
  0x5e   : > { %3115 = vmatpush3.bf16.msra.mxu0 %v3264_v52 }
  0x5f   : > { %3055 = vmatmul.mubr.msk.bf16.gmra.mxu1 %vm359_vm1, %v3489_v19  ;;  %3191 = vmatprep.subr.msk.bf16.mxu0 %vm384_vm0, %v3266_v36 }
  0x60   : > { %3058 = vmatprep.mubr.msk.bf16.mxu1 %vm359_vm1, %v3559_v55  ;;  %3093 = vmatpush3.bf16.msra.mxu1 %v3262_v4 }
  0x61   : > { %3190 = vmatprep.subr.msk.bf16.mxu1 %vm384_vm0, %v3265_v34 }
  0x64   : > { %3081 = vmatmul.mubr.msk.bf16.gmra.mxu0 %vm359_vm1, %v3855_v30 }
  0x65   : > { %3084 = vmatprep.mubr.msk.bf16.mxu0 %vm359_vm1, %v3871_v5 }
  0x67   : > { %3059 = vmatmul.mubr.msk.bf16.gmra.mxu1 %vm359_vm1, %v3606_v21 }
  0x68   : > { %3062 = vmatprep.mubr.msk.bf16.mxu1 %vm359_vm1, %v3627_v50 }
  0x6c   : > { %3085 = vmatmul.mubr.msk.bf16.gmra.mxu0 %vm359_vm1, %v2794_v0 }
  0x6d   : > { %3116 = vmatprep.mubr.msk.bf16.mxu0 %vm359_vm1, %v3583_v2  ;;  %v2140_v2 = vld [vmem:[%s4003_s23 + $0x8] sm:$0xff] }
  0x6e   : > { %2173 = vrot.lane.b32.xlu1 %v2140_v2, %s3376_s12 }
  0x6f   : > { %3063 = vmatmul.mubr.msk.bf16.gmra.mxu1 %vm359_vm1, %v2777_v28 }
  0x70   : > { %3094 = vmatprep.mubr.msk.bf16.mxu1 %vm359_vm1, %v3689_v27  ;;  %v1793_v27 = vsel %vm384_vm0, %v3265_v34, 0 }
  0x74   : > { %3117 = vmatmul.mubr.msk.bf16.vlgmr.msra.gmra.mxu0 %vm359_vm1, %v3617_v33  ;;  %v3269_v33 = vld [vmem:[%s4723_s1 + $0x8c] sm:$0xff]  }
  0x75   : > { %3155 = vmatpush3.bf16.msra.mxu0 %v1944_v3  ;;  %3120 = vmatprep.mubr.msk.bf16.mxu0 %vm359_vm1, %v3489_v19  ;;  %v2829_v19 = vcombine.low %v3890_v6, %v3895_v31  ;;  %v4095_v6 = vld [vmem:[%s4724_s2] ss:$0 sm:$0xff] }
  0x76   : > { %3156 = vmatprep.subr.bf16.mxu0 %v3268_v56 }
  0x77   : > { %3095 = vmatmul.mubr.msk.bf16.vlgmr.msra.gmra.mxu1 %vm359_vm1, %v3728_v47 }
  0x78   : > { %3133 = vmatpush3.bf16.msra.mxu1 %v1793_v27  ;;  %3098 = vmatprep.mubr.msk.bf16.mxu1 %vm359_vm1, %v3780_v15 }
  0x79   : > { %3134 = vmatprep.subr.bf16.mxu1 %v3267_v48  ;;  %3157 = vmatpush3.bf16.msra.mxu0 %v3268_v56 }
  0x7a   : > { %3158 = vmatprep.subr.bf16.mxu0 %v3271_v16 }
  0x7c   : > { %3135 = vmatpush3.bf16.msra.mxu1 %v3267_v48  ;;  %3121 = vmatmul.mubr.msk.bf16.gmra.mxu0 %vm359_vm1, %v3559_v55 }
  0x7d   : > { %3136 = vmatprep.subr.bf16.mxu1 %v3269_v33  ;;  %3124 = vmatprep.mubr.msk.bf16.mxu0 %vm359_vm1, %v3606_v21 }
  0x7e   : > { %3159 = vmatpush3.bf16.msra.mxu0 %v3271_v16 }
  0x7f   : > { %3099 = vmatmul.mubr.msk.bf16.gmra.mxu1 %vm359_vm1, %v3797_v46 }
  0x80   : > { %3102 = vmatprep.mubr.msk.bf16.mxu1 %vm359_vm1, %v3825_v37  ;;  %3137 = vmatpush3.bf16.msra.mxu1 %v3269_v33 }
  0x84   : > { %3125 = vmatmul.mubr.msk.bf16.gmra.mxu0 %vm359_vm1, %v3627_v50 }
  0x85   : > { %3128 = vmatprep.mubr.msk.bf16.mxu0 %vm359_vm1, %v2777_v28 }
  0x87   : > { %3103 = vmatmul.mubr.msk.bf16.gmra.mxu1 %vm359_vm1, %v3853_v20 }
  0x88   : > { %3106 = vmatprep.mubr.msk.bf16.mxu1 %vm359_vm1, %v3867_v60 }
  0x8c   : > { %3129 = vmatmul.mubr.msk.bf16.gmra.mxu0 %vm359_vm1, %v2829_v19 }
  0x8d   : > { %3160 = vmatprep.mubr.msk.bf16.mxu0 %vm359_vm1, %v3728_v47 }
  0x8f   : > { %3107 = vmatmul.mubr.msk.bf16.gmra.mxu1 %vm359_vm1, %v3915_v44 }
  0x90   : > { %3138 = vmatprep.mubr.msk.bf16.mxu1 %vm359_vm1, %v3745_v58 }
  0x94   : > { %3161 = vmatmul.mubr.msk.bf16.vlgmr.msra.gmra.mxu0 %vm359_vm1, %v3780_v15 }
  0x95   : > { %3164 = vmatprep.mubr.msk.bf16.mxu0 %vm359_vm1, %v3797_v46 }
  0x97   : > { %3139 = vmatmul.mubr.msk.bf16.vlgmr.msra.gmra.mxu1 %vm359_vm1, %v3778_v40 }
  0x98   : > { %3142 = vmatprep.mubr.msk.bf16.mxu1 %vm359_vm1, %v3801_v24 }
  0x9c   : > { %3165 = vmatmul.mubr.msk.bf16.gmra.mxu0 %vm359_vm1, %v3825_v37 }
  0x9d   : > { %3168 = vmatprep.mubr.msk.bf16.mxu0 %vm359_vm1, %v3853_v20 }
  0x9f   : > { %3143 = vmatmul.mubr.msk.bf16.gmra.mxu1 %vm359_vm1, %v3832_v39 }
  0xa0   : > { %3146 = vmatprep.mubr.msk.bf16.mxu1 %vm359_vm1, %v3855_v30 }
  0xa4   : > { %3169 = vmatmul.mubr.msk.bf16.gmra.mxu0 %vm359_vm1, %v3867_v60 }
  0xa5   : > { %3172 = vmatprep.mubr.msk.bf16.mxu0 %vm359_vm1, %v3915_v44 }
  0xa7   : > { %3147 = vmatmul.mubr.msk.bf16.gmra.mxu1 %vm359_vm1, %v3871_v5 }
  0xa8   : > { %3150 = vmatprep.mubr.msk.bf16.mxu1 %vm359_vm1, %v2794_v0 }
  0xac   : > { %3173 = vmatmul.mubr.msk.bf16.gmra.mxu0 %vm359_vm1, %v2864_v11 }
  0xaf   : > { %3151 = vmatmul.mubr.msk.bf16.gmra.mxu1 %vm359_vm1, %v3954_v10 }
  0xdf   : > { %v2986_v55 = vpop.f32.mrf.mxu0 }
  0xe0   : > { %v487_v1 = vadd.f32 %v2986_v55, %v4095_v6 }
  0xe1   : > { %v2994_v21 = vpop.f32.mrf.mxu1  ;;  %v422_v50 = vpop.f32.mrf.mxu0 }
  0xe2   : > { %v485_v17 = vadd.f32 %v4095_v6, %v422_v50  ;;  %v495_v3 = vadd.f32 %v2994_v21, %v4095_v6 }
  0xe3   : > { %v454_v47 = vpop.f32.mrf.mxu1  ;;  %v2987_v58 = vpop.f32.mrf.mxu0 }
  0xe4   : > { %v488_v18 = vadd.f32 %v2987_v58, %v4095_v6  ;;  %v493_v16 = vadd.f32 %v4095_v6, %v454_v47 }
  0xe5   : > { %v2995_v40 = vpop.f32.mrf.mxu1  ;;  %v425_v15 = vpop.f32.mrf.mxu0 }
  0xe6   : > { %v486_v14 = vadd.f32 %v4095_v6, %v425_v15  ;;  %v496_v50 = vadd.f32 %v2995_v40, %v4095_v6 }
  0xe7   : > { %v4084_v46 = vpop.f32.mrf.mxu1  ;;  %v2990_v24 = vpop.f32.mrf.mxu0 }
  0xe8   : > { %v491_v26 = vadd.f32 %v2990_v24, %v4095_v6 }
  0xe9   : > { %v4086_v37 = vpop.f32.mrf.mxu1  ;;  %v438_v39 = vpop.f32.mrf.mxu0 }
  0xea   : > { %v489_v53 = vadd.f32 %v4095_v6, %v438_v39 }
  0xeb   : > { %v4088_v20 = vpop.f32.mrf.mxu1  ;;  %v2991_v30 = vpop.f32.mrf.mxu0 }
  0xec   : > { %v492_v34 = vadd.f32 %v2991_v30, %v4095_v6  ;;  %v494_v30 = vadd.f32 %v4095_v6, %v4084_v46 }
  0xed   : > { %v4090_v60 = vpop.f32.mrf.mxu1  ;;  %v441_v5 = vpop.f32.mrf.mxu0 }
  0xee   : > { %v490_v61 = vadd.f32 %v4095_v6, %v441_v5 }
  0xef   : > { %v4097_v31 = vpop.f32.mrf.mxu1  ;;  %v3030_v44 = vpop.f32.mrf.mxu0 }
  0xf1   : > { %v3008_v8 = vpop.f32.mrf.mxu1  ;;  %v1054_v9 = vpop.f32.mrf.mxu0 }
  0xf2   : > { %v867_v32 = vadd.f32 %v3008_v8, %v487_v1 }
  0xf3   : > { %v802_v49 = vpop.f32.mrf.mxu1  ;;  %v3031_v25 = vpop.f32.mrf.mxu0 }
  0xf4   : > { %v4102_v54 = vadd.f32 %v3030_v44, %v867_v32  ;;  %v865_v13 = vadd.f32 %v802_v49, %v485_v17  ;;  %v497_v49 = vadd.f32 %v4095_v6, %v4088_v20 }
  0xf5   : > { %v3009_v35 = vpop.f32.mrf.mxu1  ;;  %v1057_v62 = vpop.f32.mrf.mxu0 }
  0xf6   : > { %v4105_v63 = vadd.f32 %v1054_v9, %v865_v13  ;;  %v868_v52 = vadd.f32 %v3009_v35, %v488_v18  ;;  %v499_v9 = vadd.f32 %v4086_v37, %v4095_v6  ;;  %v500_v13 = vadd.f32 %v4090_v60, %v4095_v6 }
  0xf7   : > { %v805_v29 = vpop.f32.mrf.mxu1  ;;  %v498_v37 = vadd.f32 %v4095_v6, %v4097_v31 }
  0xf8   : > { %v4107_v22 = vadd.f32 %v3031_v25, %v868_v52  ;;  %v866_v4 = vadd.f32 %v805_v29, %v486_v14 }
  0xf9   : > { %v3012_v11 = vpop.f32.mrf.mxu1 }
  0xfa   : > { %v4110_v42 = vadd.f32 %v1057_v62, %v866_v4  ;;  %v3034_v38 = vpop.f32.mrf.mxu0  ;;  %v871_v23 = vadd.f32 %v3012_v11, %v491_v26 }
  0xfb   : > { %v818_v10 = vpop.f32.mrf.mxu1 }
  0xfc   : > { %v1070_v36 = vpop.f32.mrf.mxu0  ;;  %v4114_v51 = vadd.f32 %v3034_v38, %v871_v23  ;;  %v869_v41 = vadd.f32 %v818_v10, %v489_v53 }
  0xfd   : > { %v3013_v57 = vpop.f32.mrf.mxu1 }
  0xfe   : > { %v3035_v45 = vpop.f32.mrf.mxu0  ;;  %v4117_v59 = vadd.f32 %v1070_v36, %v869_v41  ;;  %v872_v12 = vadd.f32 %v3013_v57, %v492_v34 }
  0xff   : > { %v821_v43 = vpop.f32.mrf.mxu1 }
 0x100   : > { %v1073_v0 = vpop.f32.mrf.mxu0  ;;  %v4119_v28 = vadd.f32 %v3035_v45, %v872_v12  ;;  %v870_v7 = vadd.f32 %v821_v43, %v490_v61 }
 0x102   : > { %v3038_v2 = vpop.f32.mrf.mxu0  ;;  %v4122_v56 = vadd.f32 %v1073_v0, %v870_v7 }
 0x103   : > { %v3016_v27 = vpop.f32.mrf.mxu1 }
 0x104   : > { %v1086_v48 = vpop.f32.mrf.mxu0  ;;  %v875_v33 = vadd.f32 %v3016_v27, %v495_v3 }
 0x105   : > { %v834_v19 = vpop.f32.mrf.mxu1 }
 0x106   : > { %v3039_v55 = vpop.f32.mrf.mxu0  ;;  %v4126_v58 = vadd.f32 %v3038_v2, %v875_v33  ;;  %v873_v15 = vadd.f32 %v834_v19, %v493_v16 }
 0x107   : > { %v3017_v24 = vpop.f32.mrf.mxu1 }
 0x108   : > { %v1089_v39 = vpop.f32.mrf.mxu0  ;;  %v4130_v21 = vadd.f32 %v1086_v48, %v873_v15  ;;  %v876_v5 = vadd.f32 %v3017_v24, %v496_v50 }
 0x109   : > { %v837_v44 = vpop.f32.mrf.mxu1 }
 0x10a   : > { %v4132_v1 = vadd.f32 %v3039_v55, %v876_v5  ;;  %v874_v47 = vadd.f32 %v837_v44, %v494_v30 }
 0x10c   : > { %v3042_v8 = vpop.f32.mrf.mxu0  ;;  %v4136_v40 = vadd.f32 %v1089_v39, %v874_v47 }
 0x10e   : > { %v1102_v32 = vpop.f32.mrf.mxu0 }
 0x10f   : > { %v3020_v17 = vpop.f32.mrf.mxu1 }
 0x110   : > { %v879_v25 = vadd.f32 %v3020_v17, %v499_v9  ;;  %v3043_v18 = vpop.f32.mrf.mxu0 }
 0x111   : > { %v850_v46 = vpop.f32.mrf.mxu1 }
 0x112   : > { %v4142_v35 = vadd.f32 %v3042_v8, %v879_v25  ;;  %v877_v14 = vadd.f32 %v850_v46, %v497_v49  ;;  %v1105_v29 = vpop.f32.mrf.mxu0 }
 0x113   : > { %v3021_v52 = vpop.f32.mrf.mxu1 }
 0x114   : > { %v4146_v62 = vadd.f32 %v1102_v32, %v877_v14  ;;  %v880_v4 = vadd.f32 %v3021_v52, %v500_v13  ;;  %v4148_v11 = vpop.f32.mrf.mxu0 }
 0x115   : > { %v853_v26 = vpop.f32.mrf.mxu1 }
 0x116   : > { %4737 = vst [vmem:[#allocation2_spill] sm:$0xff] %v4146_v62  ;;  %v4150_v20 = vadd.f32 %v3043_v18, %v880_v4  ;;  %v878_v38 = vadd.f32 %v853_v26, %v498_v37  ;;  %v4152_v23 = vpop.f32.mrf.mxu0 }
 0x117   : > { %v3052_v53 = vpop.f32.mrf.mxu1 }
 0x118   : > { %4738 = vst [vmem:[#allocation3_spill] sm:$0xff] %v4150_v20  ;;  %v4154_v60 = vadd.f32 %v1105_v29, %v878_v38  ;;  %v4156_v36 = vpop.f32.mrf.mxu0 }
 0x119   : > { %v1199_v10 = vpop.f32.mrf.mxu1 }
 0x11a   : > { %4739 = vst [vmem:[#allocation4_spill] sm:$0xff] %v4154_v60  ;;  %v4158_v41 = vpop.f32.mrf.mxu0 }
 0x11b   : > { %v3053_v34 = vpop.f32.mrf.mxu1 }
 0x11c   : > { %v4160_v31 = vpop.f32.mrf.mxu0 }
 0x11d   : > { %v1202_v6 = vpop.f32.mrf.mxu1 }
 0x11e   : > { %v4164_v45 = vpop.f32.mrf.mxu0 }
 0x11f   : > { %v4162_v57 = vpop.f32.mrf.mxu1 }
 0x120   : > { %v4168_v12 = vpop.f32.mrf.mxu0 }
 0x121   : > { %v4166_v61 = vpop.f32.mrf.mxu1 }
 0x122   : > { %v4172_v0 = vpop.f32.mrf.mxu0 }
 0x123   : > { %v4170_v43 = vpop.f32.mrf.mxu1 }
 0x124   : > { %v4176_v2 = vpop.f32.mrf.mxu0 }
 0x125   : > { %v4174_v7 = vpop.f32.mrf.mxu1 }
 0x126   : > { %v4180_v27 = vpop.f32.mrf.mxu0 }
 0x127   : > { %v4178_v3 = vpop.f32.mrf.mxu1 }
 0x128   : > { %v4184_v16 = vpop.f32.mrf.mxu0 }
 0x129   : > { %v4182_v48 = vpop.f32.mrf.mxu1 }
 0x12a   : > { %v4188_v19 = vpop.f32.mrf.mxu0 }
 0x12b   : > { %v4186_v33 = vpop.f32.mrf.mxu1  ;;  %4740 = vst [vmem:[#allocation5_spill] sm:$0xff] %v4188_v19 }
 0x12c   : > { %v4192_v50 = vpop.f32.mrf.mxu0 }
 0x12d   : > { %v4190_v55 = vpop.f32.mrf.mxu1  ;;  %4741 = vst [vmem:[#allocation6_spill] sm:$0xff] %v4192_v50 }
 0x12e   : > { %v4196_v24 = vpop.f32.mrf.mxu0 }
 0x12f   : > { %v4194_v15 = vpop.f32.mrf.mxu1  ;;  %4742 = vst [vmem:[#allocation7_spill] sm:$0xff] %v4196_v24 }
 0x130   : > { %v4200_v30 = vpop.f32.mrf.mxu0 }
 0x131   : > { %v4198_v39 = vpop.f32.mrf.mxu1  ;;  %4744 = vst [vmem:[#allocation9_spill] sm:$0xff] %v4200_v30 }
 0x132   : > { %4743 = vst [vmem:[#allocation8_spill] sm:$0xff] %v4198_v39  ;;  %v4204_v44 = vpop.f32.mrf.mxu0  ;;  %v1264_v39 = vadd.f32 %v3052_v53, %v4102_v54 }
 0x133   : > { %v4202_v5 = vpop.f32.mrf.mxu1  ;;  %4746 = vst [vmem:[#allocation11_spill] sm:$0xff] %v4204_v44 }
 0x134   : > { %4745 = vst [vmem:[#allocation10_spill] sm:$0xff] %v4202_v5  ;;  %v3118_v8 = vpop.f32.mrf.mxu0 }
 0x135   : > { %v4206_v47 = vpop.f32.mrf.mxu1 }
 0x136   : > { %4747 = vst [vmem:[#allocation12_spill] sm:$0xff] %v4206_v47  ;;  %v1662_v17 = vpop.f32.mrf.mxu0 }
 0x137   : > { %v3096_v9 = vpop.f32.mrf.mxu1 }
 0x138   : > { %v3119_v49 = vpop.f32.mrf.mxu0 }
 0x139   : > { %v1517_v32 = vpop.f32.mrf.mxu1 }
 0x13a   : > { %v4208_v46 = vpop.f32.mrf.mxu0 }
 0x13b   : > { %v3097_v25 = vpop.f32.mrf.mxu1 }
 0x13c   : > { %v4210_v13 = vpop.f32.mrf.mxu0 }
 0x13d   : > { %v1520_v18 = vpop.f32.mrf.mxu1 }
 0x13e   : > { %v4212_v52 = vpop.f32.mrf.mxu0 }
 0x13f   : > { %v3100_v14 = vpop.f32.mrf.mxu1 }
 0x140   : > { %v4214_v37 = vpop.f32.mrf.mxu0 }
 0x141   : > { %v1533_v29 = vpop.f32.mrf.mxu1 }
 0x142   : > { %v4216_v26 = vpop.f32.mrf.mxu0 }
 0x143   : > { %v3101_v4 = vpop.f32.mrf.mxu1  ;;  %4748 = vst [vmem:[#allocation13_spill] sm:$0xff] %v4216_v26 }
 0x144   : > { %v4220_v44 = vpop.f32.mrf.mxu0 }
 0x145   : > { %v4218_v38 = vpop.f32.mrf.mxu1  ;;  %4749 = vst [vmem:[#allocation14_spill] sm:$0xff] %v4220_v44  ;;  %v1262_v44 = vadd.f32 %v1199_v10, %v4105_v63 }
 0x146   : > { %v4224_v47 = vpop.f32.mrf.mxu0 }
 0x147   : > { %v4222_v30 = vpop.f32.mrf.mxu1  ;;  %4750 = vst [vmem:[#allocation15_spill] sm:$0xff] %v4224_v47  ;;  %v1431_v47 = vadd.f32 %v4148_v11, %v1264_v39  ;;  %v1429_v54 = vadd.f32 %v4152_v23, %v1262_v44  ;;  %v1268_v11 = vadd.f32 %v4162_v57, %v4114_v51 }
 0x148   : > { %v4228_v24 = vpop.f32.mrf.mxu0 }
 0x149   : > { %v4226_v60 = vpop.f32.mrf.mxu1  ;;  %4752 = vst [vmem:[#allocation17_spill] sm:$0xff] %v4228_v24  ;;  %v1265_v24 = vadd.f32 %v3053_v34, %v4107_v22  ;;  %v1582_v53 = vadd.f32 %v3096_v9, %v1431_v47  ;;  %v1435_v9 = vadd.f32 %v4160_v31, %v1268_v11  ;;  %v1272_v31 = vadd.f32 %v4178_v3, %v4126_v58 }
 0x14a   : > { %4751 = vst [vmem:[#allocation16_spill] sm:$0xff] %v4226_v60  ;;  %v4232_v20 = vpop.f32.mrf.mxu0  ;;  %v1270_v58 = vadd.f32 %v4182_v48, %v4130_v21 }
 0x14b   : > { %v4230_v5 = vpop.f32.mrf.mxu1  ;;  %4754 = vst [vmem:[#allocation19_spill] sm:$0xff] %v4232_v20  ;;  %v1263_v20 = vadd.f32 %v1202_v6, %v4110_v42  ;;  %v1432_v10 = vadd.f32 %v4156_v36, %v1265_v24  ;;  %v1727_v39 = vadd.f32 %v3118_v8, %v1582_v53  ;;  %v1266_v42 = vadd.f32 %v4166_v61, %v4117_v59 }
 0x14c   : > { %4753 = vst [vmem:[#allocation18_spill] sm:$0xff] %v4230_v5  ;;  %v4237_v50 = vpop.f32.mrf.mxu0  ;;  %v1269_v6 = vadd.f32 %v4170_v43, %v4119_v28  ;;  %v1267_v28 = vadd.f32 %v4174_v7, %v4122_v56 }
 0x14d   : > { %v4235_v62 = vpop.f32.mrf.mxu1  ;;  %4755 = vst [vmem:[#allocation20_spill] sm:$0xff] %v4237_v50  ;;  %v1430_v23 = vadd.f32 %v4158_v41, %v1263_v20  ;;  %v1433_v20 = vadd.f32 %v4164_v45, %v1266_v42  ;;  %v1586_v41 = vadd.f32 %v3100_v14, %v1435_v9  ;;  %v4762_v9 = vld [vmem:[#allocation2_spill] sm:$0xff] }
 0x14e   : > { %v4242_v19 = vpop.f32.mrf.mxu0  ;;  %v1436_v59 = vadd.f32 %v4168_v12, %v1269_v6  ;;  %v1434_v7 = vadd.f32 %v4172_v0, %v1267_v28  ;;  %v4758_v6 = vld [vmem:[#allocation5_spill] sm:$0xff] }
 0x14f   : > { %v4240_v26 = vpop.f32.mrf.mxu1  ;;  %4756 = vst [vmem:[#allocation21_spill] sm:$0xff] %v4242_v19  ;;  %v1580_v19 = vadd.f32 %v1517_v32, %v1429_v54  ;;  %v1581_v51 = vadd.f32 %v1520_v18, %v1430_v23  ;;  %v1731_v3 = vadd.f32 %v4210_v13, %v1586_v41 }
 0x150   : > { %v4248_v5 = vpop.f32.mrf.mxu0  ;;  %v1587_v12 = vadd.f32 %v3101_v4, %v1436_v59  ;;  %v1271_v4 = vadd.f32 %v4190_v55, %v4136_v40  ;;  %v1585_v11 = vadd.f32 %v4218_v38, %v1434_v7  ;;  %v1437_v40 = vadd.f32 %v4180_v27, %v1270_v58 }
 0x151   : > { %v4246_v60 = vpop.f32.mrf.mxu1  ;;  %4757 = vst [vmem:[#allocation22_spill] sm:$0xff] %v4248_v5  ;;  %v1583_v5 = vadd.f32 %v3097_v25, %v1432_v10  ;;  %v1725_v36 = vadd.f32 %v1662_v17, %v1580_v19  ;;  %v1726_v17 = vadd.f32 %v4208_v46, %v1581_v51  ;;  %v1439_v46 = vadd.f32 %v4176_v2, %v1272_v31  ;;  %v4763_v51 = vld [vmem:[#allocation8_spill] sm:$0xff]  ;;  %v4767_v31 = vld [vmem:[#allocation10_spill] sm:$0xff] }
 0x152   : > { %v4254_v63 = vpop.f32.mrf.mxu0  ;;  %v1276_v2 = vadd.f32 %v4194_v15, %v4142_v35  ;;  %v4760_v15 = vld [vmem:[#allocation16_spill] sm:$0xff] }
 0x153   : > { %v4252_v50 = vpop.f32.mrf.mxu1  ;;  %v1728_v54 = vadd.f32 %v3119_v49, %v1583_v5  ;;  %v1584_v49 = vadd.f32 %v1533_v29, %v1433_v20  ;;  %v1273_v29 = vadd.f32 %v4186_v33, %v4132_v1  ;;  %v1590_v1 = vadd.f32 %v4222_v30, %v1439_v46  ;;  %v4765_v20 = vld [vmem:[#allocation18_spill] sm:$0xff]  ;;  %v4771_v46 = vld [vmem:[#allocation12_spill] sm:$0xff] }
 0x154   : > { %v3162_v34 = vpop.f32.mrf.mxu0 }
 0x155   : > { %v4259_v22 = vpop.f32.mrf.mxu1  ;;  %v1729_v0 = vadd.f32 %v4212_v52, %v1584_v49  ;;  %v1440_v42 = vadd.f32 %v4184_v16, %v1273_v29 }
 0x156   : > { %v1980_v47 = vpop.f32.mrf.mxu0 }
 0x157   : > { %v3140_v44 = vpop.f32.mrf.mxu1  ;;  %v1591_v59 = vadd.f32 %v4765_v20, %v1440_v42 }
 0x158   : > { %v1894_v24 = vadd.f32 %v3140_v44, %v1727_v39  ;;  %v3163_v32 = vpop.f32.mrf.mxu0  ;;  %v1732_v39 = vadd.f32 %v4214_v37, %v1587_v12  ;;  %v1438_v44 = vadd.f32 %v4758_v6, %v1271_v4  ;;  %v1588_v37 = vadd.f32 %v4760_v15, %v1437_v40  ;;  %v4774_v40 = vld [vmem:[#allocation19_spill] sm:$0xff]  ;;  %v4778_v20 = vld [vmem:[#allocation22_spill] sm:$0xff] }
 0x159   : > { %v1829_v57 = vpop.f32.mrf.mxu1  ;;  %v4775_v6 = vld [vmem:[#allocation11_spill] sm:$0xff] }
 0x15a   : > { %v4267_v8 = vadd.f32 %v3162_v34, %v1894_v24  ;;  %v1892_v25 = vadd.f32 %v1829_v57, %v1725_v36  ;;  %v1983_v43 = vpop.f32.mrf.mxu0  ;;  %v4761_v24 = vld [vmem:[#allocation6_spill] sm:$0xff]  ;;  %v1274_v57 = vadd.f32 %v4763_v51, %v4762_v9 }
 0x15b   : > { %v3141_v61 = vpop.f32.mrf.mxu1  ;;  %v1443_v27 = vadd.f32 %v4761_v24, %v1276_v2 }
 0x15c   : > { %3272 = vtanh.f32 %v4267_v8  ;;  %v4276_v19 = vadd.f32 %v1980_v47, %v1892_v25  ;;  %v1895_v5 = vadd.f32 %v3141_v61, %v1728_v54  ;;  %v3166_v18 = vpop.f32.mrf.mxu0  ;;  %v4759_v47 = vld [vmem:[#allocation13_spill] sm:$0xff] }
 0x15d   : > { %v1832_v45 = vpop.f32.mrf.mxu1  ;;  %v1730_v35 = vadd.f32 %v4759_v47, %v1585_v11  ;;  %v1594_v4 = vadd.f32 %v4240_v26, %v1443_v27  ;;  %v4776_v47 = vld [vmem:[#allocation20_spill] sm:$0xff] }
 0x15e   : > { %3274 = vtanh.f32 %v4276_v19  ;;  %v4280_v56 = vadd.f32 %v3163_v32, %v1895_v5  ;;  %v1893_v14 = vadd.f32 %v1832_v45, %v1726_v17  ;;  %v1996_v10 = vpop.f32.mrf.mxu0  ;;  %v4764_v32 = vld [vmem:[#allocation14_spill] sm:$0xff]  ;;  %v1589_v17 = vadd.f32 %v4235_v62, %v1438_v44 }
 0x15f   : > { %v3144_v53 = vpop.f32.mrf.mxu1  ;;  %v1735_v54 = vadd.f32 %v4764_v32, %v1590_v1 }
 0x160   : > { %3276 = vtanh.f32 %v4280_v56  ;;  %v4294_v21 = vadd.f32 %v1983_v43, %v1893_v14  ;;  %v1898_v48 = vadd.f32 %v3144_v53, %v1731_v3  ;;  %v3167_v34 = vpop.f32.mrf.mxu0  ;;  %v4766_v43 = vld [vmem:[#allocation3_spill] sm:$0xff] }
 0x161   : > { %v1845_v13 = vpop.f32.mrf.mxu1  ;;  %v1277_v5 = vadd.f32 %v4767_v31, %v4766_v43  ;;  %v4769_v14 = vld [vmem:[#allocation7_spill] sm:$0xff] }
 0x162   : > { %3278 = vtanh.f32 %v4294_v21  ;;  %v4302_v33 = vadd.f32 %v3166_v18, %v1898_v48  ;;  %v1896_v55 = vadd.f32 %v1845_v13, %v1729_v0  ;;  %v1999_v38 = vpop.f32.mrf.mxu0  ;;  %v4768_v18 = vld [vmem:[#allocation15_spill] sm:$0xff]  ;;  %v1441_v53 = vadd.f32 %v4769_v14, %v1274_v57  ;;  %v4772_v0 = vld [vmem:[#allocation17_spill] sm:$0xff] }
 0x163   : > { %v3145_v52 = vpop.f32.mrf.mxu1  ;;  %v1733_v12 = vadd.f32 %v4768_v18, %v1588_v37  ;;  %v1736_v11 = vadd.f32 %v4772_v0, %v1591_v59  ;;  %v4777_v57 = vld [vmem:[#allocation21_spill] sm:$0xff] }
 0x164   : > { %v1899_v23 = vadd.f32 %v3145_v52, %v1732_v39  ;;  %v3170_v30 = vpop.f32.mrf.mxu0  ;;  %3280 = vtanh.f32 %v4302_v33  ;;  %v4316_v16 = vadd.f32 %v1996_v10, %v1896_v55  ;;  %v4770_v10 = vld [vmem:[#allocation4_spill] sm:$0xff]  ;;  %v4773_v39 = vld [vmem:[#allocation9_spill] sm:$0xff]  ;;  %v1734_v55 = vadd.f32 %v4774_v40, %v1589_v17 }
 0x165   : > { %v1848_v36 = vpop.f32.mrf.mxu1  ;;  %v1275_v29 = vadd.f32 %v4771_v46, %v4770_v10  ;;  %v1444_v1 = vadd.f32 %v4773_v39, %v1277_v5  ;;  %v1592_v52 = vadd.f32 %v4246_v60, %v1441_v53  ;;  %v2144_v39 = vld [vmem:[%s4003_s23 + $0x28] sm:$0xff]  ;;  %v2146_v40 = vld [vmem:[%s4003_s23 + $0x38] sm:$0xff] }
 0x166   : > { %v4312_v25 = vadd.f32 %v3167_v34, %v1899_v23  ;;  %v1897_v28 = vadd.f32 %v1848_v36, %v1730_v35  ;;  %v2012_v61 = vpop.f32.mrf.mxu0  ;;  %v1739_v35 = vadd.f32 %v4776_v47, %v1594_v4  ;;  %v2061_v47 = vmul.f32 0.2, %v4267_v8 }
 0x167   : > { %v3148_v41 = vpop.f32.mrf.mxu1  ;;  %v1442_v44 = vadd.f32 %v4775_v6, %v1275_v29  ;;  %v1595_v15 = vadd.f32 %v4252_v50, %v1444_v1  ;;  %v1737_v32 = vadd.f32 %v4777_v57, %v1592_v52  ;;  %v2145_v1 = vld [vmem:[%s4003_s23 + $0x30] sm:$0xff] }
 0x168   : > { %3282 = vtanh.f32 %v4312_v25  ;;  %v1902_v49 = vadd.f32 %v3148_v41, %v1735_v54  ;;  %v4323_v7 = vadd.f32 %v1999_v38, %v1897_v28  ;;  %v3171_v3 = vpop.f32.mrf.mxu0  ;;  %v2149_v52 = vld [vmem:[%s4003_s23 + $0x50] sm:$0xff] }
 0x169   : > { %v3273_v45 = vpop.eup %3272  ;;  %v1861_v58 = vpop.f32.mrf.mxu1  ;;  %3284 = vtanh.f32 %v4316_v16  ;;  %v1593_v27 = vadd.f32 %v4259_v22, %v1442_v44  ;;  %v1740_v59 = vadd.f32 %v4778_v20, %v1595_v15  ;;  %v2153_v6 = vld [vmem:[%s4003_s23 + $0x70] sm:$0xff]  ;;  %v2154_v44 = vld [vmem:[%s4003_s23 + $0x78] sm:$0xff]  ;;  %v2077_v15 = vadd.f32 0.5, %v2061_v47 }
 0x16a   : > { %2255 = vrot.lane.b32.xlu1 %v3273_v45, %s3376_s12  ;;  %v4332_v48 = vadd.f32 %v3170_v30, %v1902_v49  ;;  %v1900_v13 = vadd.f32 %v1861_v58, %v1733_v12  ;;  %v2015_v2 = vpop.f32.mrf.mxu0  ;;  %3286 = vtanh.f32 %v4323_v7 }
 0x16b   : > { %v3275_v62 = vpop.eup %3274  ;;  %v3149_v34 = vpop.f32.mrf.mxu1  ;;  %v1738_v43 = vadd.f32 %v4254_v63, %v1593_v27 }
 0x16c   : > { %2251 = vrot.lane.b32.xlu0 %v3275_v62, %s3376_s12  ;;  %v1903_v38 = vadd.f32 %v3149_v34, %v1736_v11  ;;  %v3174_v42 = vpop.f32.mrf.mxu0  ;;  %3288 = vtanh.f32 %v4332_v48  ;;  %v4344_v36 = vadd.f32 %v2012_v61, %v1900_v13  ;;  %v2141_v13 = vld [vmem:[%s4003_s23 + $0x10] sm:$0xff]  ;;  %v2142_v34 = vld [vmem:[%s4003_s23 + $0x18] sm:$0xff] }
 0x16d   : > { %v3277_v26 = vpop.eup %3276  ;;  %v1864_v23 = vpop.f32.mrf.mxu1 }
 0x16e   : > { %v1901_v37 = vadd.f32 %v1864_v23, %v1734_v55  ;;  %2257 = vrot.lane.b32.xlu1 %v3277_v26, %s3376_s12  ;;  %v4346_v30 = vadd.f32 %v3171_v3, %v1903_v38  ;;  %v2028_v51 = vpop.f32.mrf.mxu0  ;;  %v2147_v55 = vld [vmem:[%s4003_s23 + $0x40] sm:$0xff]  ;;  %v2148_v26 = vld [vmem:[%s4003_s23 + $0x48] sm:$0xff]  ;;  %v2150_v38 = vld [vmem:[%s4003_s23 + $0x58] sm:$0xff] }
 0x16f   : > { %v3152_v24 = vpop.f32.mrf.mxu1  ;;  %v3279_v60 = vpop.eup %3278  ;;  %v2151_v23 = vld [vmem:[%s4003_s23 + $0x60] sm:$0xff] }
 0x170   : > { %v1906_v9 = vadd.f32 %v3152_v24, %v1739_v35  ;;  %3290 = vtanh.f32 %v4346_v30  ;;  %v4351_v50 = vadd.f32 %v2015_v2, %v1901_v37  ;;  %2253 = vrot.lane.b32.xlu0 %v3279_v60, %s3376_s12  ;;  %v3175_v5 = vpop.f32.mrf.mxu0  ;;  %v2143_v2 = vld [vmem:[%s4003_s23 + $0x20] sm:$0xff]  ;;  %v2059_v35 = vmul.f32 0.2, %v4276_v19 }
 0x171   : > { %v1877_v54 = vpop.f32.mrf.mxu1  ;;  %3292 = vtanh.f32 %v4344_v36  ;;  %v3281_v22 = vpop.eup %3280  ;;  %v2062_v37 = vmul.f32 0.2, %v4280_v56  ;;  %v2093_v60 = vmax.f32 %v2077_v15, 0.0  ;;  %v2066_v19 = vmul.f32 0.2, %v4312_v25 }
 0x172   : > { %v4356_v28 = vadd.f32 %v3174_v42, %v1906_v9  ;;  %v1904_v41 = vadd.f32 %v1877_v54, %v1737_v32  ;;  %3294 = vtanh.f32 %v4351_v50  ;;  %v2031_v63 = vpop.f32.mrf.mxu0  ;;  %v2152_v42 = vld [vmem:[%s4003_s23 + $0x68] sm:$0xff]  ;;  %v2075_v24 = vadd.f32 0.5, %v2059_v35  ;;  %v4417_v54 = vpop.permute.xlu0 %2171 }
 0x173   : > { %v3153_v61 = vpop.f32.mrf.mxu1  ;;  %v2078_v27 = vadd.f32 0.5, %v2062_v37  ;;  %v2060_v9 = vmul.f32 0.2, %v4294_v21  ;;  %v2065_v32 = vmul.f32 0.2, %v4302_v33  ;;  %v4419_v20 = vmin.f32 %v2093_v60, 1.0 }
 0x174   : > { %v1907_v31 = vadd.f32 %v3153_v61, %v1740_v59  ;;  %2263 = vrot.lane.b32.xlu0 %v3281_v22, %s3376_s12  ;;  %3296 = vtanh.f32 %v4356_v28  ;;  %v4365_v12 = vadd.f32 %v2028_v51, %v1904_v41  ;;  %v4414_v51 = vpop.permute.xlu1 %2173  ;;  %v2091_v57 = vmax.f32 %v2075_v24, 0.0 }
 0x175   : > { %v3283_v17 = vpop.eup %3282  ;;  %v1880_v49 = vpop.f32.mrf.mxu1  ;;  %v2094_v8 = vmax.f32 %v2078_v27, 0.0  ;;  %v2076_v59 = vadd.f32 0.5, %v2060_v9  ;;  %v2081_v22 = vadd.f32 0.5, %v2065_v32  ;;  %v2063_v21 = vmul.f32 0.2, %v4316_v16 }
 0x176   : > { %v4361_v45 = vadd.f32 %v3175_v5, %v1907_v31  ;;  %v1905_v18 = vadd.f32 %v1880_v49, %v1738_v43  ;;  %2265 = vrot.lane.b32.xlu1 %v3283_v17, %s3376_s12  ;;  %v3285_v58 = vpop.eup %3284  ;;  %v4423_v61 = vmin.f32 %v2091_v57, 1.0  ;;  %v2082_v5 = vadd.f32 0.5, %v2066_v19 }
 0x177   : > { %v3287_v3 = vpop.eup %3286  ;;  %v4426_v31 = vmin.f32 %v2094_v8, 1.0  ;;  %v2092_v33 = vmax.f32 %v2076_v59, 0.0  ;;  %v2064_v17 = vmul.f32 0.2, %v4323_v7  ;;  %v2070_v7 = vmul.f32 0.2, %v4346_v30 }
 0x178   : > { %3298 = vtanh.f32 %v4361_v45  ;;  %v4368_v14 = vadd.f32 %v2031_v63, %v1905_v18  ;;  %2259 = vrot.lane.b32.xlu0 %v3285_v58, %s3376_s12  ;;  %v2097_v58 = vmax.f32 %v2081_v22, 0.0  ;;  %v2079_v63 = vadd.f32 0.5, %v2063_v21 }
 0x179   : > { %3300 = vtanh.f32 %v4365_v12  ;;  %v3289_v53 = vpop.eup %3288  ;;  %v2098_v16 = vmax.f32 %v2082_v5, 0.0  ;;  %v2071_v15 = vmul.f32 0.2, %v4365_v12  ;;  %v2073_v8 = vmul.f32 0.2, %v4356_v28 }
 0x17a   : > { %2261 = vrot.lane.b32.xlu1 %v3287_v3, %s3376_s12  ;;  %3302 = vtanh.f32 %v4368_v14  ;;  %v2069_v3 = vmul.f32 0.2, %v4332_v48  ;;  %v2072_v27 = vmul.f32 0.2, %v4368_v14 }
 0x17b   : > { %v4442_v48 = vmin.f32 %v2098_v16, 1.0  ;;  %v2087_v59 = vadd.f32 0.5, %v2071_v15  ;;  %v2219_v15 = vmul.f32 %v4417_v54, %v4423_v61 }
 0x17c   : > { %2271 = vrot.lane.b32.xlu0 %v3289_v53, %s3376_s12  ;;  %v4433_v53 = vmin.f32 %v2092_v33, 1.0  ;;  %v2088_v22 = vadd.f32 0.5, %v2072_v27 }
 0x17d   : > { %v3291_v10 = vpop.eup %3290  ;;  %v2103_v33 = vmax.f32 %v2087_v59, 0.0 }
 0x17e   : > { %2273 = vrot.lane.b32.xlu1 %v3291_v10, %s3376_s12  ;;  %v3293_v46 = vpop.eup %3292  ;;  %v2080_v10 = vadd.f32 0.5, %v2064_v17 }
 0x17f   : > { %v3295_v29 = vpop.eup %3294 }
 0x180   : > { %2267 = vrot.lane.b32.xlu0 %v3293_v46, %s3376_s12 }
 0x181   : > { %v3297_v4 = vpop.eup %3296 }
 0x182   : > { %2269 = vrot.lane.b32.xlu1 %v3295_v29, %s3376_s12 }
 0x184   : > { %2279 = vrot.lane.b32.xlu0 %v3297_v4, %s3376_s12  ;;  %v4439_v4 = vmin.f32 %v2097_v58, 1.0 }
 0x185   : > { %v3299_v62 = vpop.eup %3298 }
 0x186   : > { %2281 = vrot.lane.b32.xlu1 %v3299_v62, %s3376_s12  ;;  %v3301_v0 = vpop.eup %3300  ;;  %v2095_v62 = vmax.f32 %v2079_v63, 0.0 }
 0x187   : > { %v3303_v11 = vpop.eup %3302 }
 0x188   : > { %2275 = vrot.lane.b32.xlu0 %v3301_v0, %s3376_s12  ;;  %v2085_v0 = vadd.f32 0.5, %v2069_v3 }
 0x18a   : > { %2277 = vrot.lane.b32.xlu1 %v3303_v11, %s3376_s12  ;;  %v2067_v11 = vmul.f32 0.2, %v4344_v36 }
 0x18c   : > { %2175 = vrot.lane.b32.xlu0 %v2141_v13, %s3376_s12  ;;  %v2096_v13 = vmax.f32 %v2080_v10, 0.0 }
 0x18e   : > { %2177 = vrot.lane.b32.xlu1 %v2142_v34, %s3376_s12  ;;  %v4451_v36 = vmin.f32 %v2096_v13, 1.0 }
 0x190   : > { %2179 = vrot.lane.b32.xlu0 %v2143_v2, %s3376_s12  ;;  %v2086_v2 = vadd.f32 0.5, %v2070_v7 }
 0x192   : > { %2181 = vrot.lane.b32.xlu1 %v2144_v39, %s3376_s12  ;;  %v2068_v39 = vmul.f32 0.2, %v4351_v50 }
 0x194   : > { %2183 = vrot.lane.b32.xlu0 %v2145_v1, %s3376_s12 }
 0x196   : > { %2185 = vrot.lane.b32.xlu1 %v2146_v40, %s3376_s12 }
 0x198   : > { %2187 = vrot.lane.b32.xlu0 %v2147_v55, %s3376_s12  ;;  %v4448_v55 = vmin.f32 %v2095_v62, 1.0 }
 0x19a   : > { %2189 = vrot.lane.b32.xlu1 %v2148_v26, %s3376_s12  ;;  %v2101_v26 = vmax.f32 %v2085_v0, 0.0 }
 0x19c   : > { %2191 = vrot.lane.b32.xlu0 %v2149_v52, %s3376_s12  ;;  %v2083_v52 = vadd.f32 0.5, %v2067_v11  ;;  %v4456_v47 = vmin.f32 %v2101_v26, 1.0 }
 0x19e   : > { %2193 = vrot.lane.b32.xlu1 %v2150_v38, %s3376_s12  ;;  %v2099_v35 = vmax.f32 %v2083_v52, 0.0 }
 0x1a0   : > { %2195 = vrot.lane.b32.xlu0 %v2151_v23, %s3376_s12  ;;  %v2102_v23 = vmax.f32 %v2086_v2, 0.0  ;;  %v4465_v32 = vmin.f32 %v2099_v35, 1.0 }
 0x1a2   : > { %2197 = vrot.lane.b32.xlu1 %v2152_v42, %s3376_s12  ;;  %v2084_v42 = vadd.f32 0.5, %v2068_v39  ;;  %v4461_v24 = vmin.f32 %v2102_v23, 1.0 }
 0x1a4   : > { %2199 = vrot.lane.b32.xlu0 %v2153_v6, %s3376_s12  ;;  %v2100_v60 = vmax.f32 %v2084_v42, 0.0 }
 0x1a6   : > { %2201 = vrot.lane.b32.xlu1 %v2154_v44, %s3376_s12 }
 0x1dc   : > { %v2256_v41 = vpop.permute.xlu1 %2255 }
 0x1dd   : > { %v2301_v56 = vmul.f32 %v2256_v41, %v4419_v20  ;;  %v4470_v41 = vmin.f32 %v2100_v60, 1.0 }
 0x1de   : > { %v2252_v43 = vpop.permute.xlu0 %2251 }
 0x1df   : > { %2335 = vrot.lane.b32.xlu0 %v2301_v56, %s3376_s12  ;;  %v2299_v25 = vmul.f32 %v2252_v43, %v4423_v61  ;;  %v2074_v56 = vmul.f32 0.2, %v4361_v45  ;;  %v2089_v43 = vadd.f32 0.5, %v2073_v8  ;;  %v4478_v45 = vmin.f32 %v2103_v33, 1.0 }
 0x1e0   : > { %v2258_v49 = vpop.permute.xlu1 %2257  ;;  %v2220_v8 = vmul.f32 %v4414_v51, %v4433_v53 }
 0x1e1   : > { %v2302_v18 = vmul.f32 %v2258_v49, %v4426_v31  ;;  %v2090_v17 = vadd.f32 0.5, %v2074_v56  ;;  %v2104_v49 = vmax.f32 %v2088_v22, 0.0 }
 0x1e2   : > { %v2254_v46 = vpop.permute.xlu0 %2253 }
 0x1e3   : > { %2331 = vrot.lane.b32.xlu0 %v2299_v25, %s3376_s12  ;;  %2337 = vrot.lane.b32.xlu1 %v2302_v18, %s3376_s12  ;;  %v2300_v29 = vmul.f32 %v2254_v46, %v4433_v53  ;;  %v2105_v18 = vmax.f32 %v2089_v43, 0.0  ;;  %v2106_v63 = vmax.f32 %v2090_v17, 0.0  ;;  %v4480_v3 = vmin.f32 %v2104_v49, 1.0 }
 0x1e5   : > { %v4483_v46 = vmin.f32 %v2105_v18, 1.0 }
 0x1e6   : > { %v2264_v34 = vpop.permute.xlu0 %2263 }
 0x1e7   : > { %2333 = vrot.lane.b32.xlu1 %v2300_v29, %s3376_s12  ;;  %v2305_v1 = vmul.f32 %v2264_v34, %v4439_v4  ;;  %v4487_v29 = vmin.f32 %v2106_v63, 1.0 }
 0x1e8   : > { %v2266_v30 = vpop.permute.xlu1 %2265 }
 0x1e9   : > { %v2306_v40 = vmul.f32 %v2266_v30, %v4442_v48  ;;  %2343 = vrot.lane.b32.xlu0 %v2305_v1, %s3376_s12 }
 0x1ea   : > { %v2260_v38 = vpop.permute.xlu0 %2259 }
 0x1eb   : > { %2345 = vrot.lane.b32.xlu1 %v2306_v40, %s3376_s12  ;;  %v2303_v50 = vmul.f32 %v2260_v38, %v4448_v55 }
 0x1ec   : > { %v2262_v6 = vpop.permute.xlu1 %2261 }
 0x1ed   : > { %v2304_v44 = vmul.f32 %v2262_v6, %v4451_v36  ;;  %2339 = vrot.lane.b32.xlu0 %v2303_v50, %s3376_s12 }
 0x1ee   : > { %v2272_v37 = vpop.permute.xlu0 %2271 }
 0x1ef   : > { %2341 = vrot.lane.b32.xlu1 %v2304_v44, %s3376_s12  ;;  %v2309_v9 = vmul.f32 %v2272_v37, %v4456_v47 }
 0x1f0   : > { %v2274_v57 = vpop.permute.xlu1 %2273 }
 0x1f1   : > { %v2310_v12 = vmul.f32 %v2274_v57, %v4461_v24  ;;  %2351 = vrot.lane.b32.xlu0 %v2309_v9, %s3376_s12 }
 0x1f2   : > { %v2268_v19 = vpop.permute.xlu0 %2267 }
 0x1f3   : > { %v2307_v14 = vmul.f32 %v2268_v19, %v4465_v32  ;;  %2353 = vrot.lane.b32.xlu1 %v2310_v12, %s3376_s12 }
 0x1f4   : > { %v2270_v21 = vpop.permute.xlu1 %2269 }
 0x1f5   : > { %v2308_v28 = vmul.f32 %v2270_v21, %v4470_v41  ;;  %2347 = vrot.lane.b32.xlu0 %v2307_v14, %s3376_s12 }
 0x1f6   : > { %v2280_v5 = vpop.permute.xlu0 %2279 }
 0x1f7   : > { %2349 = vrot.lane.b32.xlu1 %v2308_v28, %s3376_s12  ;;  %v2313_v62 = vmul.f32 %v2280_v5, %v4483_v46 }
 0x1f8   : > { %v2282_v25 = vpop.permute.xlu1 %2281 }
 0x1f9   : > { %v2314_v0 = vmul.f32 %v2282_v25, %v4487_v29 }
 0x1fa   : > { %v2276_v58 = vpop.permute.xlu0 %2275 }
 0x1fb   : > { %v2311_v16 = vmul.f32 %v2276_v58, %v4478_v45 }
 0x1fc   : > { %v2278_v10 = vpop.permute.xlu1 %2277 }
 0x1fd   : > { %v2312_v7 = vmul.f32 %v2278_v10, %v4480_v3  ;;  %2355 = vrot.lane.b32.xlu0 %v2311_v16, %s3376_s12 }
 0x1fe   : > { %v2176_v11 = vpop.permute.xlu0 %2175 }
 0x1ff   : > { %2357 = vrot.lane.b32.xlu1 %v2312_v7, %s3376_s12  ;;  %v2221_v50 = vmul.f32 %v2176_v11, %v4419_v20 }
 0x200   : > { %v2178_v13 = vpop.permute.xlu1 %2177 }
 0x201   : > { %2359 = vrot.lane.b32.xlu0 %v2313_v62, %s3376_s12  ;;  %v2222_v37 = vmul.f32 %v2178_v13, %v4426_v31 }
 0x202   : > { %v2180_v34 = vpop.permute.xlu0 %2179 }
 0x203   : > { %2361 = vrot.lane.b32.xlu1 %v2314_v0, %s3376_s12  ;;  %v2223_v51 = vmul.f32 %v2180_v34, %v4448_v55 }
 0x204   : > { %v2182_v2 = vpop.permute.xlu1 %2181 }
 0x205   : > { %v2224_v43 = vmul.f32 %v2182_v2, %v4451_v36 }
 0x206   : > { %v2184_v39 = vpop.permute.xlu0 %2183 }
 0x207   : > { %v2225_v54 = vmul.f32 %v2184_v39, %v4439_v4 }
 0x208   : > { %v2186_v1 = vpop.permute.xlu1 %2185 }
 0x209   : > { %v2226_v19 = vmul.f32 %v2186_v1, %v4442_v48 }
 0x20a   : > { %v2188_v30 = vpop.permute.xlu0 %2187 }
 0x20b   : > { %v2227_v62 = vmul.f32 %v2188_v30, %v4465_v32 }
 0x20c   : > { %v2190_v40 = vpop.permute.xlu1 %2189 }
 0x20d   : > { %v2228_v34 = vmul.f32 %v2190_v40, %v4470_v41 }
 0x20e   : > { %v2192_v26 = vpop.permute.xlu0 %2191 }
 0x20f   : > { %v2229_v25 = vmul.f32 %v2192_v26, %v4456_v47 }
 0x210   : > { %v2194_v52 = vpop.permute.xlu1 %2193 }
 0x211   : > { %v2230_v63 = vmul.f32 %v2194_v52, %v4461_v24 }
 0x212   : > { %v4494_v38 = vpop.permute.xlu0 %2195 }
 0x213   : > { %v2231_v40 = vmul.f32 %v4494_v38, %v4478_v45 }
 0x214   : > { %v4496_v23 = vpop.permute.xlu1 %2197 }
 0x216   : > { %v4498_v42 = vpop.permute.xlu0 %2199 }
 0x218   : > { %v4501_v6 = vpop.permute.xlu1 %2201 }
 0x251   : > { %v2336_v44 = vpop.permute.xlu0 %2335 }
 0x252   : > { %v4503_v35 = vadd.f32 %v2336_v44, %v2221_v50 }
 0x254   : > { %3304 = vtanh.f32 %v4503_v35 }
 0x255   : > { %v2332_v60 = vpop.permute.xlu0 %2331  ;;  %v2338_v27 = vpop.permute.xlu1 %2337 }
 0x256   : > { %v4509_v9 = vadd.f32 %v2332_v60, %v2219_v15  ;;  %v4511_v57 = vadd.f32 %v2338_v27, %v2222_v37  ;;  %v2232_v15 = vmul.f32 %v4496_v23, %v4480_v3  ;;  %v2233_v27 = vmul.f32 %v4498_v42, %v4483_v46 }
 0x258   : > { %3306 = vtanh.f32 %v4509_v9 }
 0x259   : > { %3308 = vtanh.f32 %v4511_v57  ;;  %v2334_v59 = vpop.permute.xlu1 %2333 }
 0x25a   : > { %v4517_v12 = vadd.f32 %v2334_v59, %v2220_v8 }
 0x25b   : > { %v2344_v56 = vpop.permute.xlu0 %2343 }
 0x25c   : > { %3310 = vtanh.f32 %v4517_v12  ;;  %v4522_v22 = vadd.f32 %v2344_v56, %v2225_v54  ;;  %v2234_v54 = vmul.f32 %v4501_v6, %v4487_v29 }
 0x25d   : > { %v2346_v14 = vpop.permute.xlu1 %2345 }
 0x25e   : > { %v4524_v21 = vadd.f32 %v2346_v14, %v2226_v19  ;;  %3312 = vtanh.f32 %v4522_v22 }
 0x25f   : > { %v2340_v33 = vpop.permute.xlu0 %2339 }
 0x260   : > { %3314 = vtanh.f32 %v4524_v21  ;;  %v4530_v5 = vadd.f32 %v2340_v33, %v2223_v51 }
 0x261   : > { %v3305_v28 = vpop.eup %3304  ;;  %v2342_v17 = vpop.permute.xlu1 %2341 }
 0x262   : > { %v4532_v49 = vadd.f32 %v2342_v17, %v2224_v43  ;;  %2431 = vrot.lane.b32.xlu0 %v3305_v28, %s3376_s12  ;;  %3316 = vtanh.f32 %v4530_v5 }
 0x263   : > { %v2352_v18 = vpop.permute.xlu0 %2351 }
 0x264   : > { %3318 = vtanh.f32 %v4532_v49  ;;  %v4539_v16 = vadd.f32 %v2352_v18, %v2229_v25 }
 0x265   : > { %v3307_v58 = vpop.eup %3306  ;;  %v2354_v7 = vpop.permute.xlu1 %2353 }
 0x266   : > { %v3309_v10 = vpop.eup %3308  ;;  %2427 = vrot.lane.b32.xlu0 %v3307_v58, %s3376_s12  ;;  %3320 = vtanh.f32 %v4539_v16  ;;  %v4544_v0 = vadd.f32 %v2354_v7, %v2230_v63 }
 0x267   : > { %2433 = vrot.lane.b32.xlu1 %v3309_v10, %s3376_s12  ;;  %v2348_v11 = vpop.permute.xlu0 %2347 }
 0x268   : > { %3322 = vtanh.f32 %v4544_v0  ;;  %v4549_v2 = vadd.f32 %v2348_v11, %v2227_v62 }
 0x269   : > { %v3311_v13 = vpop.eup %3310  ;;  %v2350_v39 = vpop.permute.xlu1 %2349 }
 0x26a   : > { %3324 = vtanh.f32 %v4549_v2  ;;  %v4552_v1 = vadd.f32 %v2350_v39, %v2228_v34 }
 0x26b   : > { %2429 = vrot.lane.b32.xlu1 %v3311_v13, %s3376_s12  ;;  %v3313_v30 = vpop.eup %3312 }
 0x26c   : > { %3326 = vtanh.f32 %v4552_v1  ;;  %2439 = vrot.lane.b32.xlu0 %v3313_v30, %s3376_s12 }
 0x26d   : > { %v3315_v26 = vpop.eup %3314 }
 0x26f   : > { %2441 = vrot.lane.b32.xlu1 %v3315_v26, %s3376_s12  ;;  %v3317_v52 = vpop.eup %3316  ;;  %v2356_v50 = vpop.permute.xlu0 %2355 }
 0x270   : > { %v4562_v37 = vadd.f32 %v2356_v50, %v2231_v40  ;;  %2435 = vrot.lane.b32.xlu0 %v3317_v52, %s3376_s12 }
 0x271   : > { %v3319_v44 = vpop.eup %3318  ;;  %v2358_v60 = vpop.permute.xlu1 %2357 }
 0x272   : > { %3328 = vtanh.f32 %v4562_v37  ;;  %v4568_v8 = vadd.f32 %v2358_v60, %v2232_v15 }
 0x273   : > { %2437 = vrot.lane.b32.xlu1 %v3319_v44, %s3376_s12  ;;  %v3321_v38 = vpop.eup %3320  ;;  %v2360_v59 = vpop.permute.xlu0 %2359 }
 0x274   : > { %3330 = vtanh.f32 %v4568_v8  ;;  %v4574_v23 = vadd.f32 %v2360_v59, %v2233_v27  ;;  %2447 = vrot.lane.b32.xlu0 %v3321_v38, %s3376_s12 }
 0x275   : > { %v3323_v19 = vpop.eup %3322  ;;  %v2362_v56 = vpop.permute.xlu1 %2361 }
 0x276   : > { %3332 = vtanh.f32 %v4574_v23  ;;  %v4578_v42 = vadd.f32 %v2362_v56, %v2234_v54 }
 0x277   : > { %2449 = vrot.lane.b32.xlu1 %v3323_v19, %s3376_s12  ;;  %v3325_v14 = vpop.eup %3324 }
 0x278   : > { %3334 = vtanh.f32 %v4578_v42  ;;  %2443 = vrot.lane.b32.xlu0 %v3325_v14, %s3376_s12 }
 0x279   : > { %v3327_v6 = vpop.eup %3326 }
 0x27b   : > { %2445 = vrot.lane.b32.xlu1 %v3327_v6, %s3376_s12 }
 0x27f   : > { %v3329_v51 = vpop.eup %3328 }
 0x280   : > { %2451 = vrot.lane.b32.xlu0 %v3329_v51, %s3376_s12 }
 0x281   : > { %v3331_v43 = vpop.eup %3330 }
 0x282   : > { %2453 = vrot.lane.b32.xlu1 %v3331_v43, %s3376_s12 }
 0x283   : > { %v3333_v33 = vpop.eup %3332 }
 0x284   : > { %2455 = vrot.lane.b32.xlu0 %v3333_v33, %s3376_s12 }
 0x285   : > { %v3335_v28 = vpop.eup %3334 }
 0x286   : > { %2457 = vrot.lane.b32.xlu1 %v3335_v28, %s3376_s12 }
 0x2d4   : > { %v2432_v17 = vpop.permute.xlu0 %2431 }
 0x2d5   : > { %v2477_v25 = vmul.f32 %v2432_v17, %v4419_v20 }
 0x2d7   : > { %2511 = vrot.lane.b32.xlu0 %v2477_v25, %s3377_s8 }
 0x2d8   : > { %v2428_v18 = vpop.permute.xlu0 %2427 }
 0x2d9   : > { %v2475_v58 = vmul.f32 %v2428_v18, %v4423_v61  ;;  %v2434_v63 = vpop.permute.xlu1 %2433 }
 0x2da   : > { %v2478_v10 = vmul.f32 %v2434_v63, %v4426_v31 }
 0x2db   : > { %2507 = vrot.lane.b32.xlu0 %v2475_v58, %s3377_s8 }
 0x2dc   : > { %2513 = vrot.lane.b32.xlu1 %v2478_v10, %s3377_s8 }
 0x2dd   : > { %v2430_v7 = vpop.permute.xlu1 %2429 }
 0x2de   : > { %v2476_v62 = vmul.f32 %v2430_v7, %v4433_v53  ;;  %v2440_v11 = vpop.permute.xlu0 %2439 }
 0x2df   : > { %v2481_v13 = vmul.f32 %v2440_v11, %v4439_v4 }
 0x2e0   : > { %2509 = vrot.lane.b32.xlu1 %v2476_v62, %s3377_s8 }
 0x2e1   : > { %v2442_v20 = vpop.permute.xlu1 %2441  ;;  %2519 = vrot.lane.b32.xlu0 %v2481_v13, %s3377_s8 }
 0x2e2   : > { %v2482_v34 = vmul.f32 %v2442_v20, %v4442_v48  ;;  %v2436_v61 = vpop.permute.xlu0 %2435 }
 0x2e3   : > { %v2479_v31 = vmul.f32 %v2436_v61, %v4448_v55 }
 0x2e4   : > { %2521 = vrot.lane.b32.xlu1 %v2482_v34, %s3377_s8 }
 0x2e5   : > { %v2438_v39 = vpop.permute.xlu1 %2437  ;;  %2515 = vrot.lane.b32.xlu0 %v2479_v31, %s3377_s8 }
 0x2e6   : > { %v2480_v30 = vmul.f32 %v2438_v39, %v4451_v36  ;;  %v2448_v53 = vpop.permute.xlu0 %2447 }
 0x2e7   : > { %v2485_v4 = vmul.f32 %v2448_v53, %v4456_v47 }
 0x2e8   : > { %2517 = vrot.lane.b32.xlu1 %v2480_v30, %s3377_s8 }
 0x2e9   : > { %v2450_v26 = vpop.permute.xlu1 %2449  ;;  %2527 = vrot.lane.b32.xlu0 %v2485_v4, %s3377_s8 }
 0x2ea   : > { %v2486_v48 = vmul.f32 %v2450_v26, %v4461_v24  ;;  %v2444_v40 = vpop.permute.xlu0 %2443 }
 0x2eb   : > { %v2483_v55 = vmul.f32 %v2444_v40, %v4465_v32 }
 0x2ec   : > { %2529 = vrot.lane.b32.xlu1 %v2486_v48, %s3377_s8 }
 0x2ed   : > { %v2446_v52 = vpop.permute.xlu1 %2445  ;;  %2523 = vrot.lane.b32.xlu0 %v2483_v55, %s3377_s8 }
 0x2ee   : > { %v2484_v36 = vmul.f32 %v2446_v52, %v4470_v41 }
 0x2f0   : > { %2525 = vrot.lane.b32.xlu1 %v2484_v36, %s3377_s8 }
 0x2f2   : > { %v2452_v47 = vpop.permute.xlu0 %2451 }
 0x2f3   : > { %v2487_v50 = vmul.f32 %v2452_v47, %v4478_v45 }
 0x2f4   : > { %v2454_v44 = vpop.permute.xlu1 %2453 }
 0x2f5   : > { %v2488_v24 = vmul.f32 %v2454_v44, %v4480_v3  ;;  %2531 = vrot.lane.b32.xlu0 %v2487_v50, %s3377_s8 }
 0x2f6   : > { %v2456_v15 = vpop.permute.xlu0 %2455 }
 0x2f7   : > { %v2489_v32 = vmul.f32 %v2456_v15, %v4483_v46  ;;  %2533 = vrot.lane.b32.xlu1 %v2488_v24, %s3377_s8 }
 0x2f8   : > { %v2458_v60 = vpop.permute.xlu1 %2457 }
 0x2f9   : > { %v2490_v41 = vmul.f32 %v2458_v60, %v4487_v29  ;;  %2535 = vrot.lane.b32.xlu0 %v2489_v32, %s3377_s8 }
 0x2fb   : > { %2537 = vrot.lane.b32.xlu1 %v2490_v41, %s3377_s8 }
 0x349   : > { %v2512_v45 = vpop.permute.xlu0 %2511 }
 0x34a   : > { %2558 = vst.msk [vmem:[%s4625_s11 + $0x10] sm:$0xff] %vm2555_vm8, %v2512_v45 }
 0x34b   : > { %2575 = vst.msk [vmem:[%s4625_s11 + $0x10] sm:$0xff] %vm2572_vm9, %v4503_v35 }
 0x34d   : > { %v2508_v3 = vpop.permute.xlu0 %2507 }
 0x34e   : > { %2556 = vst.msk [vmem:[%s4625_s11] sm:$0xff] %vm2555_vm8, %v2508_v3  ;;  %v2514_v46 = vpop.permute.xlu1 %2513 }
 0x34f   : > { %2573 = vst.msk [vmem:[%s4625_s11] sm:$0xff] %vm2572_vm9, %v4509_v9 }
 0x350   : > { %2559 = vst.msk [vmem:[%s4625_s11 + $0x18] sm:$0xff] %vm2555_vm8, %v2514_v46 }
 0x351   : > { %2576 = vst.msk [vmem:[%s4625_s11 + $0x18] sm:$0xff] %vm2572_vm9, %v4511_v57 }
 0x352   : > { %v2510_v29 = vpop.permute.xlu1 %2509 }
 0x353   : > { %2557 = vst.msk [vmem:[%s4625_s11 + $0x8] sm:$0xff] %vm2555_vm8, %v2510_v29  ;;  %v2520_v35 = vpop.permute.xlu0 %2519 }
 0x354   : > { %2574 = vst.msk [vmem:[%s4625_s11 + $0x8] sm:$0xff] %vm2572_vm9, %v4517_v12 }
 0x355   : > { %2562 = vst.msk [vmem:[%s4625_s11 + $0x30] sm:$0xff] %vm2555_vm8, %v2520_v35 }
 0x356   : > { %2579 = vst.msk [vmem:[%s4625_s11 + $0x30] sm:$0xff] %vm2572_vm9, %v4522_v22  ;;  %v2522_v9 = vpop.permute.xlu1 %2521 }
 0x357   : > { %2563 = vst.msk [vmem:[%s4625_s11 + $0x38] sm:$0xff] %vm2555_vm8, %v2522_v9  ;;  %v2516_v57 = vpop.permute.xlu0 %2515 }
 0x358   : > { %2580 = vst.msk [vmem:[%s4625_s11 + $0x38] sm:$0xff] %vm2572_vm9, %v4524_v21 }
 0x359   : > { %2560 = vst.msk [vmem:[%s4625_s11 + $0x20] sm:$0xff] %vm2555_vm8, %v2516_v57 }
 0x35a   : > { %2577 = vst.msk [vmem:[%s4625_s11 + $0x20] sm:$0xff] %vm2572_vm9, %v4530_v5  ;;  %v2518_v12 = vpop.permute.xlu1 %2517 }
 0x35b   : > { %2561 = vst.msk [vmem:[%s4625_s11 + $0x28] sm:$0xff] %vm2555_vm8, %v2518_v12  ;;  %v2528_v22 = vpop.permute.xlu0 %2527 }
 0x35c   : > { %2578 = vst.msk [vmem:[%s4625_s11 + $0x28] sm:$0xff] %vm2572_vm9, %v4532_v49 }
 0x35d   : > { %2566 = vst.msk [vmem:[%s4625_s11 + $0x50] sm:$0xff] %vm2555_vm8, %v2528_v22 }
 0x35e   : > { %2583 = vst.msk [vmem:[%s4625_s11 + $0x50] sm:$0xff] %vm2572_vm9, %v4539_v16  ;;  %v2530_v21 = vpop.permute.xlu1 %2529 }
 0x35f   : > { %2567 = vst.msk [vmem:[%s4625_s11 + $0x58] sm:$0xff] %vm2555_vm8, %v2530_v21  ;;  %v2524_v5 = vpop.permute.xlu0 %2523 }
 0x360   : > { %2584 = vst.msk [vmem:[%s4625_s11 + $0x58] sm:$0xff] %vm2572_vm9, %v4544_v0 }
 0x361   : > { %2564 = vst.msk [vmem:[%s4625_s11 + $0x40] sm:$0xff] %vm2555_vm8, %v2524_v5 }
 0x362   : > { %2581 = vst.msk [vmem:[%s4625_s11 + $0x40] sm:$0xff] %vm2572_vm9, %v4549_v2  ;;  %v2526_v49 = vpop.permute.xlu1 %2525 }
 0x363   : > { %2565 = vst.msk [vmem:[%s4625_s11 + $0x48] sm:$0xff] %vm2555_vm8, %v2526_v49 }
 0x364   : > { %2582 = vst.msk [vmem:[%s4625_s11 + $0x48] sm:$0xff] %vm2572_vm9, %v4552_v1 }
 0x367   : > { %v2532_v16 = vpop.permute.xlu0 %2531 }
 0x368   : > { %2568 = vst.msk [vmem:[%s4625_s11 + $0x60] sm:$0xff] %vm2555_vm8, %v2532_v16 }
 0x369   : > { %2585 = vst.msk [vmem:[%s4625_s11 + $0x60] sm:$0xff] %vm2572_vm9, %v4562_v37  ;;  %v2534_v0 = vpop.permute.xlu1 %2533 }
 0x36a   : > { %2569 = vst.msk [vmem:[%s4625_s11 + $0x68] sm:$0xff] %vm2555_vm8, %v2534_v0 }
 0x36b   : > { %2586 = vst.msk [vmem:[%s4625_s11 + $0x68] sm:$0xff] %vm2572_vm9, %v4568_v8  ;;  %v2536_v27 = vpop.permute.xlu0 %2535 }
 0x36c   : > { %2570 = vst.msk [vmem:[%s4625_s11 + $0x70] sm:$0xff] %vm2555_vm8, %v2536_v27 }
 0x36d   : > { %2587 = vst.msk [vmem:[%s4625_s11 + $0x70] sm:$0xff] %vm2572_vm9, %v4574_v23  ;;  %v2538_v2 = vpop.permute.xlu1 %2537 }
 0x36e   : > { %2571 = vst.msk [vmem:[%s4625_s11 + $0x78] sm:$0xff] %vm2555_vm8, %v2538_v2 }
 0x36f   : > { %2588 = vst.msk [vmem:[%s4625_s11 + $0x78] sm:$0xff] %vm2572_vm9, %v4578_v42 }
 0x370 PF: > { %s14_s19 = sadd.s32 1, %s3374_s19   ;;  %s4779_s15 = smov %s3366_s17 }
 0x371   : > { %p11_p7 = scmp.ge.s32.totalorder %s14_s19, 6   ;;  %s4780_s16 = smov %s3370_s18 }
 0x372   : > { %s4781_s17 = smov %s4784_s20  ;;  %s4782_s18 = smov %s4788_s21 }
 0x373   :  { %13 = sbr.rel (!%p11_p7) target bundleno = 3 (0x3), region = 78 }

</bundles_post_ra>
